<compile_context>
chip_gen: v6e
topology: v6e:2x2x1
jax: 0.10.0
libtpu: 0.0.40
codegen_flags: <defaults>
</compile_context>

<pallas_src>
import functools
import math

import jax
import jax.numpy as jnp
from jax import lax
from jax.experimental import pallas as pl
from jax.experimental.pallas import tpu as pltpu


# ---------------------------------------------------------------------------
# numerics helpers (f32 elementwise math; safe on v5e which has no bf16 VPU)
# ---------------------------------------------------------------------------
def _silu(x):
    # sigmoid via EUP approximate reciprocal (keeps the divide off the VALU)
    return x * pl.reciprocal(1.0 + jnp.exp(-x), approx=True)


def _softplus(x):
    return jnp.maximum(x, 0.0) + jnp.log(1.0 + jnp.exp(-jnp.abs(x)))


def _rmsnorm(x, w, eps=1e-5):
    var = jnp.mean(x * x, axis=-1, keepdims=True)
    return x * lax.rsqrt(var + eps) * w


# ---------------------------------------------------------------------------
# fused kernel: grid = (batch_block [parallel], layer [arbitrary])
# rows inside a batch block are TIME-MAJOR: row r = t * bt + b
# ---------------------------------------------------------------------------
def mamba_fused_kernel(
        # inputs
        x_ref,
        normw_ref, inx_ref, inz_ref, convw_ref, convb_ref,
        xdt_ref, xB_ref, xC_ref, dtw_ref, dtb_ref,
        aflat_ref, dvec_ref, outw_ref,
        normf_ref, headw_ref, headb_ref,
        rexp_ref, texp_ref, rred_ref,
        # output
        o_ref,
        # scratch (persist across layer grid steps)
        resid_s, dA_s, dBx_s, h_s,
        *, seq_len, bt, d_inner, d_state, d_conv):
    L = seq_len
    rows = bt * L
    d_flat = d_inner * d_state
    bf16 = jnp.bfloat16
    layer = pl.program_id(1)

    # ---- first layer of this batch block: load the residual stream ----
    @pl.when(layer == 0)
    def _():
        resid_s[...] = x_ref[...].astype(jnp.float32)

    resid = resid_s[...]                               # (rows, d_model) f32

    # ---- pre-norm + in_proj (split x / z weights; bf16 MXU, f32 accum) ----
    xn = _rmsnorm(resid, normw_ref[...]).astype(bf16)
    x_in = jnp.dot(xn, inx_ref[...], preferred_element_type=jnp.float32)
    z = jnp.dot(xn, inz_ref[...], preferred_element_type=jnp.float32)

    # ---- causal depthwise conv1d: shifted reads of a left-zero-padded slab ----
    # rows are time-major, so "x at time t-s" is "row r - s*bt"; the zero pad
    # handles the causal left padding (and there is no cross-batch bleed since
    # all rows of this block share the same time ordering).  VPU adds only.
    cw = convw_ref[...]                                # (d_conv, d_inner)
    pad = jnp.zeros(((d_conv - 1) * bt, d_inner), jnp.float32)
    xp = jnp.concatenate([pad, x_in], axis=0)          # (rows + (d_conv-1)*bt, d_inner)
    acc = jnp.zeros((rows, d_inner), jnp.float32)
    for k in range(d_conv):                            # tiny static unroll (d_conv == 4)
        # tap k multiplies x[t - (d_conv-1-k)]  (causal Conv1d: w[d_conv-1] hits x[t])
        acc = acc + xp[k * bt:k * bt + rows, :] * cw[k:k + 1, :]
    x_act = _silu(acc + convb_ref[...])                # (rows, d_inner)
    xa16 = x_act.astype(bf16)

    # ---- x_proj (split dt / B / C weights) + dt_proj + softplus ----
    dt_low = jnp.dot(xa16, xdt_ref[...], preferred_element_type=jnp.float32)
    B_t = jnp.dot(xa16, xB_ref[...], preferred_element_type=jnp.float32)
    C_t = jnp.dot(xa16, xC_ref[...], preferred_element_type=jnp.float32)
    delta = _softplus(
        jnp.dot(dt_low.astype(bf16), dtw_ref[...],
                preferred_element_type=jnp.float32) + dtb_ref[...])

    # ---- expand to the lane-dense flattened (d_inner*d_state) state axis ----
    # single MXU push for [delta ; delta*x] and single push for [B ; C]
    rep = jnp.dot(jnp.concatenate([delta, delta * x_act], axis=0).astype(bf16),
                  rexp_ref[...], preferred_element_type=jnp.float32)
    delta_rep, dx_rep = rep[:rows], rep[rows:]
    til = jnp.dot(jnp.concatenate([B_t, C_t], axis=0).astype(bf16),
                  texp_ref[...], preferred_element_type=jnp.float32)
    B_tile, C_tile = til[:rows], til[rows:]

    dA = jnp.exp(delta_rep * aflat_ref[...])           # (rows, d_flat)
    dBx = dx_rep * B_tile                              # (rows, d_flat)

    # ---- serial selective scan over time ----
    # per-step reads/writes are contiguous blocks at a dynamic LEADING index
    dA_s[...] = dA.reshape(L, bt, d_flat)
    dBx_s[...] = dBx.reshape(L, bt, d_flat)

    def scan_step(t, h):
        h = dA_s[t] * h + dBx_s[t]
        h_s[t] = h
        return h

    lax.fori_loop(0, L, scan_step, jnp.zeros((bt, d_flat), jnp.float32),
                  unroll=(L <= 32))

    # ---- contract the state axis in one vectorized shot; gate; out_proj ----
    g = (h_s[...].reshape(rows, d_flat) * C_tile).astype(bf16)
    y = jnp.dot(g, rred_ref[...], preferred_element_type=jnp.float32)
    y = y + x_act * dvec_ref[...]                      # D skip connection (standard Mamba)
    y = y * _silu(z)                                   # gate with SiLU(z)
    resid = resid + jnp.dot(y.astype(bf16), outw_ref[...],
                            preferred_element_type=jnp.float32)
    resid_s[...] = resid

    # ---- last layer: final RMSNorm + head (Dropout is identity in eval) ----
    @pl.when(layer == pl.num_programs(1) - 1)
    def _():
        hn = _rmsnorm(resid, normf_ref[...]).astype(bf16)
        out = jnp.dot(hn, headw_ref[...],
                      preferred_element_type=jnp.float32) + headb_ref[...]
        o_ref[...] = out.astype(o_ref.dtype)           # lane-dense (rows, 128) store


# ---------------------------------------------------------------------------
# wrapper
# ---------------------------------------------------------------------------
def _pick_bt(batch):
    # up to 8 batch elements per block (sublane fill in the scan) while keeping
    # >=2 blocks when possible so v7x's second TensorCore gets work.
    for bt in (8, 4, 2, 1):
        if batch % bt == 0 and batch // bt >= 2:
            return bt
    return batch


def mamba_module_forward(x, params):
    B, L, d_model = x.shape
    cfg = params["config"]
    n_layers, d_inner = cfg["n_layers"], cfg["d_inner"]
    d_state, d_conv = cfg["d_state"], cfg["d_conv"]
    output_size = cfg["output_size"]
    out_pad = params["head_w_pad"].shape[1]
    d_flat = d_inner * d_state

    bt = _pick_bt(B)
    nb = B // bt
    rows = bt * L

    # constant 0/1 expand / tile / reduce matrices over the flattened state axis
    r_exp = jnp.kron(jnp.eye(d_inner, dtype=jnp.float32),
                     jnp.ones((1, d_state), jnp.float32)).astype(jnp.bfloat16)
    t_exp = jnp.kron(jnp.ones((1, d_inner), jnp.float32),
                     jnp.eye(d_state, dtype=jnp.float32)).astype(jnp.bfloat16)
    r_red = r_exp.T                                    # (d_flat, d_inner)

    # time-major row layout per batch block: row r = t*bt + b
    x_blk = (x.reshape(nb, bt, L, d_model)
              .transpose(0, 2, 1, 3)
              .reshape(nb, rows, d_model))

    inputs = [x_blk,
              params["norm_w"], params["in_proj_x_w"], params["in_proj_z_w"],
              params["conv_w"], params["conv_b"],
              params["x_proj_dt_w"], params["x_proj_B_w"], params["x_proj_C_w"],
              params["dt_proj_w"], params["dt_proj_b"],
              params["A_neg_flat"], params["D"], params["out_proj_w"],
              params["norm_f_w"], params["head_w_pad"], params["head_b_pad"],
              r_exp, t_exp, r_red]

    def batch_block_spec(arr):
        return pl.BlockSpec((None,) + arr.shape[1:], lambda b, l: (b, 0, 0))

    def layer_spec(arr):                               # streamed per layer step
        return pl.BlockSpec((None,) + arr.shape[1:], lambda b, l: (l, 0, 0))

    def shared_spec(arr):                              # resident (block idx constant)
        return pl.BlockSpec(arr.shape, lambda b, l: (0, 0))

    in_specs = ([batch_block_spec(x_blk)]
                + [layer_spec(inputs[i]) for i in range(1, 14)]
                + [shared_spec(a) for a in inputs[14:]])
    out_spec = pl.BlockSpec((None, rows, out_pad), lambda b, l: (b, 0, 0))

    scratch = [pltpu.VMEM((rows, d_model), jnp.float32),   # residual stream
               pltpu.VMEM((L, bt, d_flat), jnp.float32),   # dA
               pltpu.VMEM((L, bt, d_flat), jnp.float32),   # dB*x
               pltpu.VMEM((L, bt, d_flat), jnp.float32)]   # h

    kernel = functools.partial(
        mamba_fused_kernel, seq_len=L, bt=bt, d_inner=d_inner,
        d_state=d_state, d_conv=d_conv)

    # VMEM budget from the actual buffers (double-buffered inputs), capped for v7x
    in_bytes = sum(int(a.size) * a.dtype.itemsize for a in inputs)
    out_bytes = nb * rows * out_pad * 4
    scratch_bytes = (rows * d_model + 3 * L * bt * d_flat) * 4
    vmem_limit = int(min(max(2 * in_bytes + 2 * out_bytes + scratch_bytes
                             + (4 << 20), 8 << 20), 64 << 20))

    out = pl.pallas_call(
        kernel,
        out_shape=jax.ShapeDtypeStruct((nb, rows, out_pad), jnp.float32),
        grid_spec=pltpu.PrefetchScalarGridSpec(
            num_scalar_prefetch=0,
            grid=(nb, n_layers),
            in_specs=in_specs,
            out_specs=out_spec,
            scratch_shapes=scratch),
        compiler_params=pltpu.CompilerParams(
            dimension_semantics=("parallel", "arbitrary"),
            vmem_limit_bytes=vmem_limit),
    )(*inputs)

    out = (out.reshape(nb, L, bt, out_pad)
              .transpose(0, 2, 1, 3)
              .reshape(B, L, out_pad))
    return out[..., :output_size]


# ---------------------------------------------------------------------------
# deterministic parameter initialization (synthetic, no checkpoint)
# ---------------------------------------------------------------------------
def init_mamba_params(key, d_model=16, n_layers=2, output_size=64,
                      d_state=16, expand=2, d_conv=4, out_pad=128):
    d_inner = expand * d_model
    dt_rank = math.ceil(d_model / 16)
    dt_rank_pad = max(8, dt_rank)   # zero-padded rows/cols -> math identical
    bf16, f32 = jnp.bfloat16, jnp.float32

    norm_w, inx, inz, convw, convb = [], [], [], [], []
    xdt, xB, xC, dtw, dtb, aflat, dvec, outw = [], [], [], [], [], [], [], []
    for i in range(n_layers):
        k = jax.random.fold_in(key, i)
        k1, k2, k3, k4, k5, k6, k7, k8 = jax.random.split(k, 8)
        norm_w.append(jnp.ones((1, d_model), f32))
        inx.append((jax.random.normal(k1, (d_model, d_inner), f32) * 0.02).astype(bf16))
        inz.append((jax.random.normal(k7, (d_model, d_inner), f32) * 0.02).astype(bf16))
        convw.append(jax.random.normal(k2, (d_conv, d_inner), f32) * 0.1)
        convb.append(jnp.zeros((1, d_inner), f32))
        xdt.append(jnp.pad(jax.random.normal(k3, (d_inner, dt_rank), f32) * 0.02,
                           ((0, 0), (0, dt_rank_pad - dt_rank))).astype(bf16))
        xB.append((jax.random.normal(k4, (d_inner, d_state), f32) * 0.02).astype(bf16))
        xC.append((jax.random.normal(k8, (d_inner, d_state), f32) * 0.02).astype(bf16))
        dtw.append(jnp.pad(jax.random.normal(k5, (dt_rank, d_inner), f32)
                           * dt_rank ** -0.5,
                           ((0, dt_rank_pad - dt_rank), (0, 0))).astype(bf16))
        dtb.append(jax.random.uniform(k6, (1, d_inner), dtype=f32) * 0.1 - 3.0)
        A_log = jnp.log(jnp.broadcast_to(
            jnp.arange(1, d_state + 1, dtype=f32)[None, :], (d_inner, d_state)))
        aflat.append((-jnp.exp(A_log)).reshape(1, d_inner * d_state))  # A = -exp(A_log)
        dvec.append(jnp.ones((1, d_inner), f32))
        outw.append((jax.random.normal(jax.random.fold_in(k, 99),
                                       (d_inner, d_model), f32) * 0.02).astype(bf16))

    kh = jax.random.fold_in(key, 1000)
    head_w = jax.random.normal(kh, (d_model, output_size), f32) * 0.02
    head_w_pad = jnp.pad(head_w, ((0, 0), (0, out_pad - output_size))).astype(bf16)
    head_b_pad = jnp.zeros((1, out_pad), f32)

    return dict(
        config=dict(n_layers=n_layers, d_inner=d_inner, d_state=d_state,
                    d_conv=d_conv, output_size=output_size),
        norm_w=jnp.stack(norm_w), in_proj_x_w=jnp.stack(inx),
        in_proj_z_w=jnp.stack(inz), conv_w=jnp.stack(convw),
        conv_b=jnp.stack(convb), x_proj_dt_w=jnp.stack(xdt),
        x_proj_B_w=jnp.stack(xB), x_proj_C_w=jnp.stack(xC),
        dt_proj_w=jnp.stack(dtw), dt_proj_b=jnp.stack(dtb),
        A_neg_flat=jnp.stack(aflat), D=jnp.stack(dvec),
        out_proj_w=jnp.stack(outw),
        norm_f_w=jnp.ones((1, d_model), f32),
        head_w_pad=head_w_pad, head_b_pad=head_b_pad,
    )


if __name__ == "__main__":
    B, L, d_model = 2, 8, 16
    n_layers, output_size = 2, 64

    key = jax.random.PRNGKey(0)
    pkey, xkey = jax.random.split(key)
    params = init_mamba_params(pkey, d_model=d_model, n_layers=n_layers,
                               output_size=output_size)
    x = jax.random.normal(xkey, (B, L, d_model), dtype=jnp.float32)

    y = mamba_module_forward(x, params)
    jax.block_until_ready(y)
    assert y.shape == (B, L, output_size), y.shape
    assert bool(jnp.all(jnp.isfinite(y)))
    print("KERNEL_OK")
</pallas_src>

<mosaic_0001>
module attributes {stable_mosaic.version = 11 : i64} {
  func.func @mamba_fused_kernel(%arg0: i32, %arg1: i32, %arg2: memref<1x8x16xf32, #tpu.memory_space<vmem>>, %arg3: memref<1x1x16xf32, #tpu.memory_space<vmem>>, %arg4: memref<1x16x32xbf16, #tpu.memory_space<vmem>>, %arg5: memref<1x16x32xbf16, #tpu.memory_space<vmem>>, %arg6: memref<1x4x32xf32, #tpu.memory_space<vmem>>, %arg7: memref<1x1x32xf32, #tpu.memory_space<vmem>>, %arg8: memref<1x32x8xbf16, #tpu.memory_space<vmem>>, %arg9: memref<1x32x16xbf16, #tpu.memory_space<vmem>>, %arg10: memref<1x32x16xbf16, #tpu.memory_space<vmem>>, %arg11: memref<1x8x32xbf16, #tpu.memory_space<vmem>>, %arg12: memref<1x1x32xf32, #tpu.memory_space<vmem>>, %arg13: memref<1x1x512xf32, #tpu.memory_space<vmem>>, %arg14: memref<1x1x32xf32, #tpu.memory_space<vmem>>, %arg15: memref<1x32x16xbf16, #tpu.memory_space<vmem>>, %arg16: memref<1x16xf32, #tpu.memory_space<vmem>>, %arg17: memref<16x128xbf16, #tpu.memory_space<vmem>>, %arg18: memref<1x128xf32, #tpu.memory_space<vmem>>, %arg19: memref<32x512xbf16, #tpu.memory_space<vmem>>, %arg20: memref<16x512xbf16, #tpu.memory_space<vmem>>, %arg21: memref<512x32xbf16, #tpu.memory_space<vmem>>, %arg22: memref<1x8x128xf32, #tpu.memory_space<vmem>>, %arg23: memref<8x16xf32, #tpu.memory_space<vmem>>, %arg24: memref<8x1x512xf32, #tpu.memory_space<vmem>>, %arg25: memref<8x1x512xf32, #tpu.memory_space<vmem>>, %arg26: memref<8x1x512xf32, #tpu.memory_space<vmem>>) attributes {dimension_semantics = [#tpu.dimension_semantics<parallel>, #tpu.dimension_semantics<arbitrary>], iteration_bounds = array<i64: 2, 2>, scalar_prefetch = 0 : i64, scratch_operands = 4 : i64, tpu.core_type = #tpu.core_type<tc>, window_params = [{transform_indices = @transform_0, window_bounds = array<i64: 1, 8, 16>}, {transform_indices = @transform_1, window_bounds = array<i64: 1, 1, 16>}, {transform_indices = @transform_2, window_bounds = array<i64: 1, 16, 32>}, {transform_indices = @transform_3, window_bounds = array<i64: 1, 16, 32>}, {transform_indices = @transform_4, window_bounds = array<i64: 1, 4, 32>}, {transform_indices = @transform_5, window_bounds = array<i64: 1, 1, 32>}, {transform_indices = @transform_6, window_bounds = array<i64: 1, 32, 8>}, {transform_indices = @transform_7, window_bounds = array<i64: 1, 32, 16>}, {transform_indices = @transform_8, window_bounds = array<i64: 1, 32, 16>}, {transform_indices = @transform_9, window_bounds = array<i64: 1, 8, 32>}, {transform_indices = @transform_10, window_bounds = array<i64: 1, 1, 32>}, {transform_indices = @transform_11, window_bounds = array<i64: 1, 1, 512>}, {transform_indices = @transform_12, window_bounds = array<i64: 1, 1, 32>}, {transform_indices = @transform_13, window_bounds = array<i64: 1, 32, 16>}, {pipeline_mode = #tpu.pipeline_mode<synchronous>, transform_indices = @transform_14, window_bounds = array<i64: 1, 16>}, {pipeline_mode = #tpu.pipeline_mode<synchronous>, transform_indices = @transform_15, window_bounds = array<i64: 16, 128>}, {pipeline_mode = #tpu.pipeline_mode<synchronous>, transform_indices = @transform_16, window_bounds = array<i64: 1, 128>}, {pipeline_mode = #tpu.pipeline_mode<synchronous>, transform_indices = @transform_17, window_bounds = array<i64: 32, 512>}, {pipeline_mode = #tpu.pipeline_mode<synchronous>, transform_indices = @transform_18, window_bounds = array<i64: 16, 512>}, {pipeline_mode = #tpu.pipeline_mode<synchronous>, transform_indices = @transform_19, window_bounds = array<i64: 512, 32>}, {transform_indices = @transform_20, window_bounds = array<i64: 1, 8, 128>}]} {
    %c0_i32 = arith.constant 0 : i32
    %0 = arith.cmpi eq, %arg1, %c0_i32 : i32
    %1 = arith.extui %0 : i1 to i32
    %c0_i32_0 = arith.constant 0 : i32
    %2 = arith.cmpi ne, %1, %c0_i32_0 : i32
    scf.if %2 {
      %c0_131 = arith.constant 0 : index
      %c0_132 = arith.constant 0 : index
      %c0_133 = arith.constant 0 : index
      %237 = vector.load %arg2[%c0_131, %c0_132, %c0_133] : memref<1x8x16xf32, #tpu.memory_space<vmem>>, vector<1x8x16xf32>
      %238 = vector.shape_cast %237 : vector<1x8x16xf32> to vector<8x16xf32>
      %c0_134 = arith.constant 0 : index
      %c0_135 = arith.constant 0 : index
      %239 = vector.load %arg23[%c0_134, %c0_135] : memref<8x16xf32, #tpu.memory_space<vmem>>, vector<8x16xf32>
      tpu.vector_store %arg23[%c0_134, %c0_135], %238 {strides = array<i32>} : memref<8x16xf32, #tpu.memory_space<vmem>>, vector<8x16xf32>,
    } else {
    }
    %c0 = arith.constant 0 : index
    %c0_1 = arith.constant 0 : index
    %3 = vector.load %arg23[%c0, %c0_1] : memref<8x16xf32, #tpu.memory_space<vmem>>, vector<8x16xf32>
    %c0_2 = arith.constant 0 : index
    %c0_3 = arith.constant 0 : index
    %c0_4 = arith.constant 0 : index
    %4 = vector.load %arg3[%c0_2, %c0_3, %c0_4] : memref<1x1x16xf32, #tpu.memory_space<vmem>>, vector<1x1x16xf32>
    %5 = vector.shape_cast %4 : vector<1x1x16xf32> to vector<1x16xf32>
    %6 = arith.mulf %3, %3 : vector<8x16xf32>
    %cst = arith.constant dense<0.000000e+00> : vector<8xf32>
    %7 = vector.multi_reduction <add>, %6, %cst [1] : vector<8x16xf32> to vector<8xf32>
    %8 = vector.shape_cast %7 : vector<8xf32> to vector<8x1xf32>
    %cst_5 = arith.constant 1.600000e+01 : f32
    %9 = vector.broadcast %cst_5 : f32 to vector<8x1xf32>
    %10 = arith.divf %8, %9 : vector<8x1xf32>
    %cst_6 = arith.constant 9.99999974E-6 : f32
    %11 = vector.broadcast %cst_6 : f32 to vector<8x1xf32>
    %12 = arith.addf %10, %11 : vector<8x1xf32>
    %13 = math.rsqrt %12 : vector<8x1xf32>
    %14 = vector.broadcast %13 : vector<8x1xf32> to vector<8x16xf32>
    %15 = arith.mulf %3, %14 : vector<8x16xf32>
    %16 = vector.broadcast %5 : vector<1x16xf32> to vector<8x16xf32>
    %17 = arith.mulf %15, %16 : vector<8x16xf32>
    %18 = arith.truncf %17 : vector<8x16xf32> to vector<8x16xbf16>
    %c0_7 = arith.constant 0 : index
    %c0_8 = arith.constant 0 : index
    %c0_9 = arith.constant 0 : index
    %19 = vector.load %arg4[%c0_7, %c0_8, %c0_9] : memref<1x16x32xbf16, #tpu.memory_space<vmem>>, vector<1x16x32xbf16>
    %20 = vector.shape_cast %19 : vector<1x16x32xbf16> to vector<16x32xbf16>
    %cst_10 = arith.constant dense<0.000000e+00> : vector<8x32xf32>
    %21 = tpu.matmul %18, %20, %cst_10 {dimension_numbers = #tpu.dot_dimension_numbers<[1], [0], [0], [1], [0, 0, 1, 1], [], []>} : vector<8x16xbf16>, vector<16x32xbf16>, vector<8x32xf32> -> vector<8x32xf32>
    %c0_11 = arith.constant 0 : index
    %c0_12 = arith.constant 0 : index
    %c0_13 = arith.constant 0 : index
    %22 = vector.load %arg5[%c0_11, %c0_12, %c0_13] : memref<1x16x32xbf16, #tpu.memory_space<vmem>>, vector<1x16x32xbf16>
    %23 = vector.shape_cast %22 : vector<1x16x32xbf16> to vector<16x32xbf16>
    %cst_14 = arith.constant dense<0.000000e+00> : vector<8x32xf32>
    %24 = tpu.matmul %18, %23, %cst_14 {dimension_numbers = #tpu.dot_dimension_numbers<[1], [0], [0], [1], [0, 0, 1, 1], [], []>} : vector<8x16xbf16>, vector<16x32xbf16>, vector<8x32xf32> -> vector<8x32xf32>
    %c0_15 = arith.constant 0 : index
    %c0_16 = arith.constant 0 : index
    %c0_17 = arith.constant 0 : index
    %25 = vector.load %arg6[%c0_15, %c0_16, %c0_17] : memref<1x4x32xf32, #tpu.memory_space<vmem>>, vector<1x4x32xf32>
    %26 = vector.shape_cast %25 : vector<1x4x32xf32> to vector<4x32xf32>
    %cst_18 = arith.constant 0.000000e+00 : f32
    %27 = vector.broadcast %cst_18 : f32 to vector<3x32xf32>
    %28 = tpu.concatenate %27, %21 in 0 : vector<3x32xf32>, vector<8x32xf32> -> vector<11x32xf32>
    %cst_19 = arith.constant 0.000000e+00 : f32
    %29 = vector.broadcast %cst_19 : f32 to vector<8x32xf32>
    %30 = vector.extract_strided_slice %28 {offsets = [0, 0], sizes = [8, 32], strides = [1, 1]} : vector<11x32xf32> to vector<8x32xf32>
    %31 = vector.extract_strided_slice %26 {offsets = [0, 0], sizes = [1, 32], strides = [1, 1]} : vector<4x32xf32> to vector<1x32xf32>
    %32 = vector.broadcast %31 : vector<1x32xf32> to vector<8x32xf32>
    %33 = arith.mulf %30, %32 : vector<8x32xf32>
    %34 = arith.addf %29, %33 : vector<8x32xf32>
    %35 = vector.extract_strided_slice %28 {offsets = [1, 0], sizes = [8, 32], strides = [1, 1]} : vector<11x32xf32> to vector<8x32xf32>
    %36 = vector.extract_strided_slice %26 {offsets = [1, 0], sizes = [1, 32], strides = [1, 1]} : vector<4x32xf32> to vector<1x32xf32>
    %37 = vector.broadcast %36 : vector<1x32xf32> to vector<8x32xf32>
    %38 = arith.mulf %35, %37 : vector<8x32xf32>
    %39 = arith.addf %34, %38 : vector<8x32xf32>
    %40 = vector.extract_strided_slice %28 {offsets = [2, 0], sizes = [8, 32], strides = [1, 1]} : vector<11x32xf32> to vector<8x32xf32>
    %41 = vector.extract_strided_slice %26 {offsets = [2, 0], sizes = [1, 32], strides = [1, 1]} : vector<4x32xf32> to vector<1x32xf32>
    %42 = vector.broadcast %41 : vector<1x32xf32> to vector<8x32xf32>
    %43 = arith.mulf %40, %42 : vector<8x32xf32>
    %44 = arith.addf %39, %43 : vector<8x32xf32>
    %45 = vector.extract_strided_slice %28 {offsets = [3, 0], sizes = [8, 32], strides = [1, 1]} : vector<11x32xf32> to vector<8x32xf32>
    %46 = vector.extract_strided_slice %26 {offsets = [3, 0], sizes = [1, 32], strides = [1, 1]} : vector<4x32xf32> to vector<1x32xf32>
    %47 = vector.broadcast %46 : vector<1x32xf32> to vector<8x32xf32>
    %48 = arith.mulf %45, %47 : vector<8x32xf32>
    %49 = arith.addf %44, %48 : vector<8x32xf32>
    %c0_20 = arith.constant 0 : index
    %c0_21 = arith.constant 0 : index
    %c0_22 = arith.constant 0 : index
    %50 = vector.load %arg7[%c0_20, %c0_21, %c0_22] : memref<1x1x32xf32, #tpu.memory_space<vmem>>, vector<1x1x32xf32>
    %51 = vector.shape_cast %50 : vector<1x1x32xf32> to vector<1x32xf32>
    %52 = vector.broadcast %51 : vector<1x32xf32> to vector<8x32xf32>
    %53 = arith.addf %49, %52 : vector<8x32xf32>
    %cst_23 = arith.constant 0.000000e+00 : f32
    %54 = vector.broadcast %cst_23 : f32 to vector<8x32xf32>
    %55 = arith.subf %54, %53 : vector<8x32xf32>
    %56 = math.exp %55 : vector<8x32xf32>
    %cst_24 = arith.constant 1.000000e+00 : f32
    %57 = vector.broadcast %cst_24 : f32 to vector<8x32xf32>
    %58 = arith.addf %57, %56 : vector<8x32xf32>
    %59 = tpu.reciprocal %58 {approx = true} : vector<8x32xf32> -> vector<8x32xf32>
    %60 = arith.mulf %53, %59 : vector<8x32xf32>
    %61 = arith.truncf %60 : vector<8x32xf32> to vector<8x32xbf16>
    %c0_25 = arith.constant 0 : index
    %c0_26 = arith.constant 0 : index
    %c0_27 = arith.constant 0 : index
    %62 = vector.load %arg8[%c0_25, %c0_26, %c0_27] : memref<1x32x8xbf16, #tpu.memory_space<vmem>>, vector<1x32x8xbf16>
    %63 = vector.shape_cast %62 : vector<1x32x8xbf16> to vector<32x8xbf16>
    %cst_28 = arith.constant dense<0.000000e+00> : vector<8x8xf32>
    %64 = tpu.matmul %61, %63, %cst_28 {dimension_numbers = #tpu.dot_dimension_numbers<[1], [0], [0], [1], [0, 0, 1, 1], [], []>} : vector<8x32xbf16>, vector<32x8xbf16>, vector<8x8xf32> -> vector<8x8xf32>
    %c0_29 = arith.constant 0 : index
    %c0_30 = arith.constant 0 : index
    %c0_31 = arith.constant 0 : index
    %65 = vector.load %arg9[%c0_29, %c0_30, %c0_31] : memref<1x32x16xbf16, #tpu.memory_space<vmem>>, vector<1x32x16xbf16>
    %66 = vector.shape_cast %65 : vector<1x32x16xbf16> to vector<32x16xbf16>
    %cst_32 = arith.constant dense<0.000000e+00> : vector<8x16xf32>
    %67 = tpu.matmul %61, %66, %cst_32 {dimension_numbers = #tpu.dot_dimension_numbers<[1], [0], [0], [1], [0, 0, 1, 1], [], []>} : vector<8x32xbf16>, vector<32x16xbf16>, vector<8x16xf32> -> vector<8x16xf32>
    %c0_33 = arith.constant 0 : index
    %c0_34 = arith.constant 0 : index
    %c0_35 = arith.constant 0 : index
    %68 = vector.load %arg10[%c0_33, %c0_34, %c0_35] : memref<1x32x16xbf16, #tpu.memory_space<vmem>>, vector<1x32x16xbf16>
    %69 = vector.shape_cast %68 : vector<1x32x16xbf16> to vector<32x16xbf16>
    %cst_36 = arith.constant dense<0.000000e+00> : vector<8x16xf32>
    %70 = tpu.matmul %61, %69, %cst_36 {dimension_numbers = #tpu.dot_dimension_numbers<[1], [0], [0], [1], [0, 0, 1, 1], [], []>} : vector<8x32xbf16>, vector<32x16xbf16>, vector<8x16xf32> -> vector<8x16xf32>
    %71 = arith.truncf %64 : vector<8x8xf32> to vector<8x8xbf16>
    %c0_37 = arith.constant 0 : index
    %c0_38 = arith.constant 0 : index
    %c0_39 = arith.constant 0 : index
    %72 = vector.load %arg11[%c0_37, %c0_38, %c0_39] : memref<1x8x32xbf16, #tpu.memory_space<vmem>>, vector<1x8x32xbf16>
    %73 = vector.shape_cast %72 : vector<1x8x32xbf16> to vector<8x32xbf16>
    %cst_40 = arith.constant dense<0.000000e+00> : vector<8x32xf32>
    %74 = tpu.matmul %71, %73, %cst_40 {dimension_numbers = #tpu.dot_dimension_numbers<[1], [0], [0], [1], [0, 0, 1, 1], [], []>} : vector<8x8xbf16>, vector<8x32xbf16>, vector<8x32xf32> -> vector<8x32xf32>
    %c0_41 = arith.constant 0 : index
    %c0_42 = arith.constant 0 : index
    %c0_43 = arith.constant 0 : index
    %75 = vector.load %arg12[%c0_41, %c0_42, %c0_43] : memref<1x1x32xf32, #tpu.memory_space<vmem>>, vector<1x1x32xf32>
    %76 = vector.shape_cast %75 : vector<1x1x32xf32> to vector<1x32xf32>
    %77 = vector.broadcast %76 : vector<1x32xf32> to vector<8x32xf32>
    %78 = arith.addf %74, %77 : vector<8x32xf32>
    %cst_44 = arith.constant 0.000000e+00 : f32
    %79 = vector.broadcast %cst_44 : f32 to vector<8x32xf32>
    %80 = arith.maximumf %78, %79 : vector<8x32xf32>
    %81 = math.absf %78 : vector<8x32xf32>
    %cst_45 = arith.constant 0.000000e+00 : f32
    %82 = vector.broadcast %cst_45 : f32 to vector<8x32xf32>
    %83 = arith.subf %82, %81 : vector<8x32xf32>
    %84 = math.exp %83 : vector<8x32xf32>
    %cst_46 = arith.constant 1.000000e+00 : f32
    %85 = vector.broadcast %cst_46 : f32 to vector<8x32xf32>
    %86 = arith.addf %85, %84 : vector<8x32xf32>
    %87 = math.log %86 : vector<8x32xf32>
    %88 = arith.addf %80, %87 : vector<8x32xf32>
    %89 = arith.mulf %88, %60 : vector<8x32xf32>
    %90 = tpu.concatenate %88, %89 in 0 : vector<8x32xf32>, vector<8x32xf32> -> vector<16x32xf32>
    %91 = arith.truncf %90 : vector<16x32xf32> to vector<16x32xbf16>
    %c0_47 = arith.constant 0 : index
    %c0_48 = arith.constant 0 : index
    %92 = vector.load %arg19[%c0_47, %c0_48] : memref<32x512xbf16, #tpu.memory_space<vmem>>, vector<32x512xbf16>
    %cst_49 = arith.constant dense<0.000000e+00> : vector<16x512xf32>
    %93 = tpu.matmul %91, %92, %cst_49 {dimension_numbers = #tpu.dot_dimension_numbers<[1], [0], [0], [1], [0, 0, 1, 1], [], []>} : vector<16x32xbf16>, vector<32x512xbf16>, vector<16x512xf32> -> vector<16x512xf32>
    %94 = vector.extract_strided_slice %93 {offsets = [0, 0], sizes = [8, 512], strides = [1, 1]} : vector<16x512xf32> to vector<8x512xf32>
    %95 = vector.extract_strided_slice %93 {offsets = [8, 0], sizes = [8, 512], strides = [1, 1]} : vector<16x512xf32> to vector<8x512xf32>
    %96 = tpu.concatenate %67, %70 in 0 : vector<8x16xf32>, vector<8x16xf32> -> vector<16x16xf32>
    %97 = arith.truncf %96 : vector<16x16xf32> to vector<16x16xbf16>
    %c0_50 = arith.constant 0 : index
    %c0_51 = arith.constant 0 : index
    %98 = vector.load %arg20[%c0_50, %c0_51] : memref<16x512xbf16, #tpu.memory_space<vmem>>, vector<16x512xbf16>
    %cst_52 = arith.constant dense<0.000000e+00> : vector<16x512xf32>
    %99 = tpu.matmul %97, %98, %cst_52 {dimension_numbers = #tpu.dot_dimension_numbers<[1], [0], [0], [1], [0, 0, 1, 1], [], []>} : vector<16x16xbf16>, vector<16x512xbf16>, vector<16x512xf32> -> vector<16x512xf32>
    %100 = vector.extract_strided_slice %99 {offsets = [0, 0], sizes = [8, 512], strides = [1, 1]} : vector<16x512xf32> to vector<8x512xf32>
    %101 = vector.extract_strided_slice %99 {offsets = [8, 0], sizes = [8, 512], strides = [1, 1]} : vector<16x512xf32> to vector<8x512xf32>
    %c0_53 = arith.constant 0 : index
    %c0_54 = arith.constant 0 : index
    %c0_55 = arith.constant 0 : index
    %102 = vector.load %arg13[%c0_53, %c0_54, %c0_55] : memref<1x1x512xf32, #tpu.memory_space<vmem>>, vector<1x1x512xf32>
    %103 = vector.shape_cast %102 : vector<1x1x512xf32> to vector<1x512xf32>
    %104 = vector.broadcast %103 : vector<1x512xf32> to vector<8x512xf32>
    %105 = arith.mulf %94, %104 : vector<8x512xf32>
    %106 = math.exp %105 : vector<8x512xf32>
    %107 = arith.mulf %95, %100 : vector<8x512xf32>
    %108 = vector.shape_cast %106 : vector<8x512xf32> to vector<8x1x512xf32>
    %c0_56 = arith.constant 0 : index
    %c0_57 = arith.constant 0 : index
    %c0_58 = arith.constant 0 : index
    %109 = vector.load %arg24[%c0_56, %c0_57, %c0_58] : memref<8x1x512xf32, #tpu.memory_space<vmem>>, vector<8x1x512xf32>
    tpu.vector_store %arg24[%c0_56, %c0_57, %c0_58], %108 {strides = array<i32>} : memref<8x1x512xf32, #tpu.memory_space<vmem>>, vector<8x1x512xf32>,
    %110 = vector.shape_cast %107 : vector<8x512xf32> to vector<8x1x512xf32>
    %c0_59 = arith.constant 0 : index
    %c0_60 = arith.constant 0 : index
    %c0_61 = arith.constant 0 : index
    %111 = vector.load %arg25[%c0_59, %c0_60, %c0_61] : memref<8x1x512xf32, #tpu.memory_space<vmem>>, vector<8x1x512xf32>
    tpu.vector_store %arg25[%c0_59, %c0_60, %c0_61], %110 {strides = array<i32>} : memref<8x1x512xf32, #tpu.memory_space<vmem>>, vector<8x1x512xf32>,
    %cst_62 = arith.constant 0.000000e+00 : f32
    %112 = vector.broadcast %cst_62 : f32 to vector<1x512xf32>
    %c0_i32_63 = arith.constant 0 : i32
    %113 = arith.index_cast %c0_i32_63 : i32 to index
    %c0_64 = arith.constant 0 : index
    %c0_65 = arith.constant 0 : index
    %114 = vector.load %arg24[%113, %c0_64, %c0_65] : memref<8x1x512xf32, #tpu.memory_space<vmem>>, vector<1x1x512xf32>
    %115 = vector.shape_cast %114 : vector<1x1x512xf32> to vector<1x512xf32>
    %116 = arith.mulf %115, %112 : vector<1x512xf32>
    %117 = arith.index_cast %c0_i32_63 : i32 to index
    %c0_66 = arith.constant 0 : index
    %c0_67 = arith.constant 0 : index
    %118 = vector.load %arg25[%117, %c0_66, %c0_67] : memref<8x1x512xf32, #tpu.memory_space<vmem>>, vector<1x1x512xf32>
    %119 = vector.shape_cast %118 : vector<1x1x512xf32> to vector<1x512xf32>
    %120 = arith.addf %116, %119 : vector<1x512xf32>
    %121 = arith.index_cast %c0_i32_63 : i32 to index
    %c0_68 = arith.constant 0 : index
    %c0_69 = arith.constant 0 : index
    %122 = vector.load %arg26[%121, %c0_68, %c0_69] : memref<8x1x512xf32, #tpu.memory_space<vmem>>, vector<1x1x512xf32>
    %123 = vector.shape_cast %122 : vector<1x1x512xf32> to vector<1x512xf32>
    %124 = vector.shape_cast %120 : vector<1x512xf32> to vector<1x1x512xf32>
    tpu.vector_store %arg26[%121, %c0_68, %c0_69], %124 {strides = array<i32>} : memref<8x1x512xf32, #tpu.memory_space<vmem>>, vector<1x1x512xf32>,
    %c1_i32 = arith.constant 1 : i32
    %125 = arith.index_cast %c1_i32 : i32 to index
    %c0_70 = arith.constant 0 : index
    %c0_71 = arith.constant 0 : index
    %126 = vector.load %arg24[%125, %c0_70, %c0_71] : memref<8x1x512xf32, #tpu.memory_space<vmem>>, vector<1x1x512xf32>
    %127 = vector.shape_cast %126 : vector<1x1x512xf32> to vector<1x512xf32>
    %128 = arith.mulf %127, %120 : vector<1x512xf32>
    %129 = arith.index_cast %c1_i32 : i32 to index
    %c0_72 = arith.constant 0 : index
    %c0_73 = arith.constant 0 : index
    %130 = vector.load %arg25[%129, %c0_72, %c0_73] : memref<8x1x512xf32, #tpu.memory_space<vmem>>, vector<1x1x512xf32>
    %131 = vector.shape_cast %130 : vector<1x1x512xf32> to vector<1x512xf32>
    %132 = arith.addf %128, %131 : vector<1x512xf32>
    %133 = arith.index_cast %c1_i32 : i32 to index
    %c0_74 = arith.constant 0 : index
    %c0_75 = arith.constant 0 : index
    %134 = vector.load %arg26[%133, %c0_74, %c0_75] : memref<8x1x512xf32, #tpu.memory_space<vmem>>, vector<1x1x512xf32>
    %135 = vector.shape_cast %134 : vector<1x1x512xf32> to vector<1x512xf32>
    %136 = vector.shape_cast %132 : vector<1x512xf32> to vector<1x1x512xf32>
    tpu.vector_store %arg26[%133, %c0_74, %c0_75], %136 {strides = array<i32>} : memref<8x1x512xf32, #tpu.memory_space<vmem>>, vector<1x1x512xf32>,
    %c2_i32 = arith.constant 2 : i32
    %137 = arith.index_cast %c2_i32 : i32 to index
    %c0_76 = arith.constant 0 : index
    %c0_77 = arith.constant 0 : index
    %138 = vector.load %arg24[%137, %c0_76, %c0_77] : memref<8x1x512xf32, #tpu.memory_space<vmem>>, vector<1x1x512xf32>
    %139 = vector.shape_cast %138 : vector<1x1x512xf32> to vector<1x512xf32>
    %140 = arith.mulf %139, %132 : vector<1x512xf32>
    %141 = arith.index_cast %c2_i32 : i32 to index
    %c0_78 = arith.constant 0 : index
    %c0_79 = arith.constant 0 : index
    %142 = vector.load %arg25[%141, %c0_78, %c0_79] : memref<8x1x512xf32, #tpu.memory_space<vmem>>, vector<1x1x512xf32>
    %143 = vector.shape_cast %142 : vector<1x1x512xf32> to vector<1x512xf32>
    %144 = arith.addf %140, %143 : vector<1x512xf32>
    %145 = arith.index_cast %c2_i32 : i32 to index
    %c0_80 = arith.constant 0 : index
    %c0_81 = arith.constant 0 : index
    %146 = vector.load %arg26[%145, %c0_80, %c0_81] : memref<8x1x512xf32, #tpu.memory_space<vmem>>, vector<1x1x512xf32>
    %147 = vector.shape_cast %146 : vector<1x1x512xf32> to vector<1x512xf32>
    %148 = vector.shape_cast %144 : vector<1x512xf32> to vector<1x1x512xf32>
    tpu.vector_store %arg26[%145, %c0_80, %c0_81], %148 {strides = array<i32>} : memref<8x1x512xf32, #tpu.memory_space<vmem>>, vector<1x1x512xf32>,
    %c3_i32 = arith.constant 3 : i32
    %149 = arith.index_cast %c3_i32 : i32 to index
    %c0_82 = arith.constant 0 : index
    %c0_83 = arith.constant 0 : index
    %150 = vector.load %arg24[%149, %c0_82, %c0_83] : memref<8x1x512xf32, #tpu.memory_space<vmem>>, vector<1x1x512xf32>
    %151 = vector.shape_cast %150 : vector<1x1x512xf32> to vector<1x512xf32>
    %152 = arith.mulf %151, %144 : vector<1x512xf32>
    %153 = arith.index_cast %c3_i32 : i32 to index
    %c0_84 = arith.constant 0 : index
    %c0_85 = arith.constant 0 : index
    %154 = vector.load %arg25[%153, %c0_84, %c0_85] : memref<8x1x512xf32, #tpu.memory_space<vmem>>, vector<1x1x512xf32>
    %155 = vector.shape_cast %154 : vector<1x1x512xf32> to vector<1x512xf32>
    %156 = arith.addf %152, %155 : vector<1x512xf32>
    %157 = arith.index_cast %c3_i32 : i32 to index
    %c0_86 = arith.constant 0 : index
    %c0_87 = arith.constant 0 : index
    %158 = vector.load %arg26[%157, %c0_86, %c0_87] : memref<8x1x512xf32, #tpu.memory_space<vmem>>, vector<1x1x512xf32>
    %159 = vector.shape_cast %158 : vector<1x1x512xf32> to vector<1x512xf32>
    %160 = vector.shape_cast %156 : vector<1x512xf32> to vector<1x1x512xf32>
    tpu.vector_store %arg26[%157, %c0_86, %c0_87], %160 {strides = array<i32>} : memref<8x1x512xf32, #tpu.memory_space<vmem>>, vector<1x1x512xf32>,
    %c4_i32 = arith.constant 4 : i32
    %161 = arith.index_cast %c4_i32 : i32 to index
    %c0_88 = arith.constant 0 : index
    %c0_89 = arith.constant 0 : index
    %162 = vector.load %arg24[%161, %c0_88, %c0_89] : memref<8x1x512xf32, #tpu.memory_space<vmem>>, vector<1x1x512xf32>
    %163 = vector.shape_cast %162 : vector<1x1x512xf32> to vector<1x512xf32>
    %164 = arith.mulf %163, %156 : vector<1x512xf32>
    %165 = arith.index_cast %c4_i32 : i32 to index
    %c0_90 = arith.constant 0 : index
    %c0_91 = arith.constant 0 : index
    %166 = vector.load %arg25[%165, %c0_90, %c0_91] : memref<8x1x512xf32, #tpu.memory_space<vmem>>, vector<1x1x512xf32>
    %167 = vector.shape_cast %166 : vector<1x1x512xf32> to vector<1x512xf32>
    %168 = arith.addf %164, %167 : vector<1x512xf32>
    %169 = arith.index_cast %c4_i32 : i32 to index
    %c0_92 = arith.constant 0 : index
    %c0_93 = arith.constant 0 : index
    %170 = vector.load %arg26[%169, %c0_92, %c0_93] : memref<8x1x512xf32, #tpu.memory_space<vmem>>, vector<1x1x512xf32>
    %171 = vector.shape_cast %170 : vector<1x1x512xf32> to vector<1x512xf32>
    %172 = vector.shape_cast %168 : vector<1x512xf32> to vector<1x1x512xf32>
    tpu.vector_store %arg26[%169, %c0_92, %c0_93], %172 {strides = array<i32>} : memref<8x1x512xf32, #tpu.memory_space<vmem>>, vector<1x1x512xf32>,
    %c5_i32 = arith.constant 5 : i32
    %173 = arith.index_cast %c5_i32 : i32 to index
    %c0_94 = arith.constant 0 : index
    %c0_95 = arith.constant 0 : index
    %174 = vector.load %arg24[%173, %c0_94, %c0_95] : memref<8x1x512xf32, #tpu.memory_space<vmem>>, vector<1x1x512xf32>
    %175 = vector.shape_cast %174 : vector<1x1x512xf32> to vector<1x512xf32>
    %176 = arith.mulf %175, %168 : vector<1x512xf32>
    %177 = arith.index_cast %c5_i32 : i32 to index
    %c0_96 = arith.constant 0 : index
    %c0_97 = arith.constant 0 : index
    %178 = vector.load %arg25[%177, %c0_96, %c0_97] : memref<8x1x512xf32, #tpu.memory_space<vmem>>, vector<1x1x512xf32>
    %179 = vector.shape_cast %178 : vector<1x1x512xf32> to vector<1x512xf32>
    %180 = arith.addf %176, %179 : vector<1x512xf32>
    %181 = arith.index_cast %c5_i32 : i32 to index
    %c0_98 = arith.constant 0 : index
    %c0_99 = arith.constant 0 : index
    %182 = vector.load %arg26[%181, %c0_98, %c0_99] : memref<8x1x512xf32, #tpu.memory_space<vmem>>, vector<1x1x512xf32>
    %183 = vector.shape_cast %182 : vector<1x1x512xf32> to vector<1x512xf32>
    %184 = vector.shape_cast %180 : vector<1x512xf32> to vector<1x1x512xf32>
    tpu.vector_store %arg26[%181, %c0_98, %c0_99], %184 {strides = array<i32>} : memref<8x1x512xf32, #tpu.memory_space<vmem>>, vector<1x1x512xf32>,
    %c6_i32 = arith.constant 6 : i32
    %185 = arith.index_cast %c6_i32 : i32 to index
    %c0_100 = arith.constant 0 : index
    %c0_101 = arith.constant 0 : index
    %186 = vector.load %arg24[%185, %c0_100, %c0_101] : memref<8x1x512xf32, #tpu.memory_space<vmem>>, vector<1x1x512xf32>
    %187 = vector.shape_cast %186 : vector<1x1x512xf32> to vector<1x512xf32>
    %188 = arith.mulf %187, %180 : vector<1x512xf32>
    %189 = arith.index_cast %c6_i32 : i32 to index
    %c0_102 = arith.constant 0 : index
    %c0_103 = arith.constant 0 : index
    %190 = vector.load %arg25[%189, %c0_102, %c0_103] : memref<8x1x512xf32, #tpu.memory_space<vmem>>, vector<1x1x512xf32>
    %191 = vector.shape_cast %190 : vector<1x1x512xf32> to vector<1x512xf32>
    %192 = arith.addf %188, %191 : vector<1x512xf32>
    %193 = arith.index_cast %c6_i32 : i32 to index
    %c0_104 = arith.constant 0 : index
    %c0_105 = arith.constant 0 : index
    %194 = vector.load %arg26[%193, %c0_104, %c0_105] : memref<8x1x512xf32, #tpu.memory_space<vmem>>, vector<1x1x512xf32>
    %195 = vector.shape_cast %194 : vector<1x1x512xf32> to vector<1x512xf32>
    %196 = vector.shape_cast %192 : vector<1x512xf32> to vector<1x1x512xf32>
    tpu.vector_store %arg26[%193, %c0_104, %c0_105], %196 {strides = array<i32>} : memref<8x1x512xf32, #tpu.memory_space<vmem>>, vector<1x1x512xf32>,
    %c7_i32 = arith.constant 7 : i32
    %197 = arith.index_cast %c7_i32 : i32 to index
    %c0_106 = arith.constant 0 : index
    %c0_107 = arith.constant 0 : index
    %198 = vector.load %arg24[%197, %c0_106, %c0_107] : memref<8x1x512xf32, #tpu.memory_space<vmem>>, vector<1x1x512xf32>
    %199 = vector.shape_cast %198 : vector<1x1x512xf32> to vector<1x512xf32>
    %200 = arith.mulf %199, %192 : vector<1x512xf32>
    %201 = arith.index_cast %c7_i32 : i32 to index
    %c0_108 = arith.constant 0 : index
    %c0_109 = arith.constant 0 : index
    %202 = vector.load %arg25[%201, %c0_108, %c0_109] : memref<8x1x512xf32, #tpu.memory_space<vmem>>, vector<1x1x512xf32>
    %203 = vector.shape_cast %202 : vector<1x1x512xf32> to vector<1x512xf32>
    %204 = arith.addf %200, %203 : vector<1x512xf32>
    %205 = arith.index_cast %c7_i32 : i32 to index
    %c0_110 = arith.constant 0 : index
    %c0_111 = arith.constant 0 : index
    %206 = vector.load %arg26[%205, %c0_110, %c0_111] : memref<8x1x512xf32, #tpu.memory_space<vmem>>, vector<1x1x512xf32>
    %207 = vector.shape_cast %206 : vector<1x1x512xf32> to vector<1x512xf32>
    %208 = vector.shape_cast %204 : vector<1x512xf32> to vector<1x1x512xf32>
    tpu.vector_store %arg26[%205, %c0_110, %c0_111], %208 {strides = array<i32>} : memref<8x1x512xf32, #tpu.memory_space<vmem>>, vector<1x1x512xf32>,
    %c8_i32 = arith.constant 8 : i32
    %c0_112 = arith.constant 0 : index
    %c0_113 = arith.constant 0 : index
    %c0_114 = arith.constant 0 : index
    %209 = vector.load %arg26[%c0_112, %c0_113, %c0_114] : memref<8x1x512xf32, #tpu.memory_space<vmem>>, vector<8x1x512xf32>
    %210 = vector.shape_cast %209 : vector<8x1x512xf32> to vector<8x512xf32>
    %211 = arith.mulf %210, %101 : vector<8x512xf32>
    %212 = arith.truncf %211 : vector<8x512xf32> to vector<8x512xbf16>
    %c0_115 = arith.constant 0 : index
    %c0_116 = arith.constant 0 : index
    %213 = vector.load %arg21[%c0_115, %c0_116] : memref<512x32xbf16, #tpu.memory_space<vmem>>, vector<512x32xbf16>
    %cst_117 = arith.constant dense<0.000000e+00> : vector<8x32xf32>
    %214 = tpu.matmul %212, %213, %cst_117 {dimension_numbers = #tpu.dot_dimension_numbers<[1], [0], [0], [1], [0, 0, 1, 1], [], []>} : vector<8x512xbf16>, vector<512x32xbf16>, vector<8x32xf32> -> vector<8x32xf32>
    %c0_118 = arith.constant 0 : index
    %c0_119 = arith.constant 0 : index
    %c0_120 = arith.constant 0 : index
    %215 = vector.load %arg14[%c0_118, %c0_119, %c0_120] : memref<1x1x32xf32, #tpu.memory_space<vmem>>, vector<1x1x32xf32>
    %216 = vector.shape_cast %215 : vector<1x1x32xf32> to vector<1x32xf32>
    %217 = vector.broadcast %216 : vector<1x32xf32> to vector<8x32xf32>
    %218 = arith.mulf %60, %217 : vector<8x32xf32>
    %219 = arith.addf %214, %218 : vector<8x32xf32>
    %cst_121 = arith.constant 0.000000e+00 : f32
    %220 = vector.broadcast %cst_121 : f32 to vector<8x32xf32>
    %221 = arith.subf %220, %24 : vector<8x32xf32>
    %222 = math.exp %221 : vector<8x32xf32>
    %cst_122 = arith.constant 1.000000e+00 : f32
    %223 = vector.broadcast %cst_122 : f32 to vector<8x32xf32>
    %224 = arith.addf %223, %222 : vector<8x32xf32>
    %225 = tpu.reciprocal %224 {approx = true} : vector<8x32xf32> -> vector<8x32xf32>
    %226 = arith.mulf %24, %225 : vector<8x32xf32>
    %227 = arith.mulf %219, %226 : vector<8x32xf32>
    %228 = arith.truncf %227 : vector<8x32xf32> to vector<8x32xbf16>
    %c0_123 = arith.constant 0 : index
    %c0_124 = arith.constant 0 : index
    %c0_125 = arith.constant 0 : index
    %229 = vector.load %arg15[%c0_123, %c0_124, %c0_125] : memref<1x32x16xbf16, #tpu.memory_space<vmem>>, vector<1x32x16xbf16>
    %230 = vector.shape_cast %229 : vector<1x32x16xbf16> to vector<32x16xbf16>
    %cst_126 = arith.constant dense<0.000000e+00> : vector<8x16xf32>
    %231 = tpu.matmul %228, %230, %cst_126 {dimension_numbers = #tpu.dot_dimension_numbers<[1], [0], [0], [1], [0, 0, 1, 1], [], []>} : vector<8x32xbf16>, vector<32x16xbf16>, vector<8x16xf32> -> vector<8x16xf32>
    %232 = arith.addf %3, %231 : vector<8x16xf32>
    %c0_127 = arith.constant 0 : index
    %c0_128 = arith.constant 0 : index
    %233 = vector.load %arg23[%c0_127, %c0_128] : memref<8x16xf32, #tpu.memory_space<vmem>>, vector<8x16xf32>
    tpu.vector_store %arg23[%c0_127, %c0_128], %232 {strides = array<i32>} : memref<8x16xf32, #tpu.memory_space<vmem>>, vector<8x16xf32>,
    %c1_i32_129 = arith.constant 1 : i32
    %234 = arith.cmpi eq, %arg1, %c1_i32_129 : i32
    %235 = arith.extui %234 : i1 to i32
    %c0_i32_130 = arith.constant 0 : i32
    %236 = arith.cmpi ne, %235, %c0_i32_130 : i32
    scf.if %236 {
      %c0_131 = arith.constant 0 : index
      %c0_132 = arith.constant 0 : index
      %237 = vector.load %arg16[%c0_131, %c0_132] : memref<1x16xf32, #tpu.memory_space<vmem>>, vector<1x16xf32>
      %238 = arith.mulf %232, %232 : vector<8x16xf32>
      %cst_133 = arith.constant dense<0.000000e+00> : vector<8xf32>
      %239 = vector.multi_reduction <add>, %238, %cst_133 [1] : vector<8x16xf32> to vector<8xf32>
      %240 = vector.shape_cast %239 : vector<8xf32> to vector<8x1xf32>
      %cst_134 = arith.constant 1.600000e+01 : f32
      %241 = vector.broadcast %cst_134 : f32 to vector<8x1xf32>
      %242 = arith.divf %240, %241 : vector<8x1xf32>
      %cst_135 = arith.constant 9.99999974E-6 : f32
      %243 = vector.broadcast %cst_135 : f32 to vector<8x1xf32>
      %244 = arith.addf %242, %243 : vector<8x1xf32>
      %245 = math.rsqrt %244 : vector<8x1xf32>
      %246 = vector.broadcast %245 : vector<8x1xf32> to vector<8x16xf32>
      %247 = arith.mulf %232, %246 : vector<8x16xf32>
      %248 = vector.broadcast %237 : vector<1x16xf32> to vector<8x16xf32>
      %249 = arith.mulf %247, %248 : vector<8x16xf32>
      %250 = arith.truncf %249 : vector<8x16xf32> to vector<8x16xbf16>
      %c0_136 = arith.constant 0 : index
      %c0_137 = arith.constant 0 : index
      %251 = vector.load %arg17[%c0_136, %c0_137] : memref<16x128xbf16, #tpu.memory_space<vmem>>, vector<16x128xbf16>
      %cst_138 = arith.constant dense<0.000000e+00> : vector<8x128xf32>
      %252 = tpu.matmul %250, %251, %cst_138 {dimension_numbers = #tpu.dot_dimension_numbers<[1], [0], [0], [1], [0, 0, 1, 1], [], []>} : vector<8x16xbf16>, vector<16x128xbf16>, vector<8x128xf32> -> vector<8x128xf32>
      %c0_139 = arith.constant 0 : index
      %c0_140 = arith.constant 0 : index
      %253 = vector.load %arg18[%c0_139, %c0_140] : memref<1x128xf32, #tpu.memory_space<vmem>>, vector<1x128xf32>
      %254 = vector.broadcast %253 : vector<1x128xf32> to vector<8x128xf32>
      %255 = arith.addf %252, %254 : vector<8x128xf32>
      %c0_141 = arith.constant 0 : index
      %c0_142 = arith.constant 0 : index
      %c0_143 = arith.constant 0 : index
      %256 = vector.load %arg22[%c0_141, %c0_142, %c0_143] : memref<1x8x128xf32, #tpu.memory_space<vmem>>, vector<1x8x128xf32>
      %257 = vector.shape_cast %256 : vector<1x8x128xf32> to vector<8x128xf32>
      %258 = vector.shape_cast %255 : vector<8x128xf32> to vector<1x8x128xf32>
      tpu.vector_store %arg22[%c0_141, %c0_142, %c0_143], %258 {strides = array<i32>} : memref<1x8x128xf32, #tpu.memory_space<vmem>>, vector<1x8x128xf32>,
    } else {
    }
    return
  }
  func.func @transform_0(%arg0: i32, %arg1: i32) -> (i32, i32, i32) {
    %c0_i32 = arith.constant 0 : i32
    %c0_i32_0 = arith.constant 0 : i32
    %c0_i32_1 = arith.constant 0 : i32
    return %arg0, %c0_i32, %c0_i32_0 : i32, i32, i32
  }
  func.func @transform_1(%arg0: i32, %arg1: i32) -> (i32, i32, i32) {
    %c0_i32 = arith.constant 0 : i32
    %c0_i32_0 = arith.constant 0 : i32
    %c0_i32_1 = arith.constant 0 : i32
    return %arg1, %c0_i32, %c0_i32_0 : i32, i32, i32
  }
  func.func @transform_2(%arg0: i32, %arg1: i32) -> (i32, i32, i32) {
    %c0_i32 = arith.constant 0 : i32
    %c0_i32_0 = arith.constant 0 : i32
    %c0_i32_1 = arith.constant 0 : i32
    return %arg1, %c0_i32, %c0_i32_0 : i32, i32, i32
  }
  func.func @transform_3(%arg0: i32, %arg1: i32) -> (i32, i32, i32) {
    %c0_i32 = arith.constant 0 : i32
    %c0_i32_0 = arith.constant 0 : i32
    %c0_i32_1 = arith.constant 0 : i32
    return %arg1, %c0_i32, %c0_i32_0 : i32, i32, i32
  }
  func.func @transform_4(%arg0: i32, %arg1: i32) -> (i32, i32, i32) {
    %c0_i32 = arith.constant 0 : i32
    %c0_i32_0 = arith.constant 0 : i32
    %c0_i32_1 = arith.constant 0 : i32
    return %arg1, %c0_i32, %c0_i32_0 : i32, i32, i32
  }
  func.func @transform_5(%arg0: i32, %arg1: i32) -> (i32, i32, i32) {
    %c0_i32 = arith.constant 0 : i32
    %c0_i32_0 = arith.constant 0 : i32
    %c0_i32_1 = arith.constant 0 : i32
    return %arg1, %c0_i32, %c0_i32_0 : i32, i32, i32
  }
  func.func @transform_6(%arg0: i32, %arg1: i32) -> (i32, i32, i32) {
    %c0_i32 = arith.constant 0 : i32
    %c0_i32_0 = arith.constant 0 : i32
    %c0_i32_1 = arith.constant 0 : i32
    return %arg1, %c0_i32, %c0_i32_0 : i32, i32, i32
  }
  func.func @transform_7(%arg0: i32, %arg1: i32) -> (i32, i32, i32) {
    %c0_i32 = arith.constant 0 : i32
    %c0_i32_0 = arith.constant 0 : i32
    %c0_i32_1 = arith.constant 0 : i32
    return %arg1, %c0_i32, %c0_i32_0 : i32, i32, i32
  }
  func.func @transform_8(%arg0: i32, %arg1: i32) -> (i32, i32, i32) {
    %c0_i32 = arith.constant 0 : i32
    %c0_i32_0 = arith.constant 0 : i32
    %c0_i32_1 = arith.constant 0 : i32
    return %arg1, %c0_i32, %c0_i32_0 : i32, i32, i32
  }
  func.func @transform_9(%arg0: i32, %arg1: i32) -> (i32, i32, i32) {
    %c0_i32 = arith.constant 0 : i32
    %c0_i32_0 = arith.constant 0 : i32
    %c0_i32_1 = arith.constant 0 : i32
    return %arg1, %c0_i32, %c0_i32_0 : i32, i32, i32
  }
  func.func @transform_10(%arg0: i32, %arg1: i32) -> (i32, i32, i32) {
    %c0_i32 = arith.constant 0 : i32
    %c0_i32_0 = arith.constant 0 : i32
    %c0_i32_1 = arith.constant 0 : i32
    return %arg1, %c0_i32, %c0_i32_0 : i32, i32, i32
  }
  func.func @transform_11(%arg0: i32, %arg1: i32) -> (i32, i32, i32) {
    %c0_i32 = arith.constant 0 : i32
    %c0_i32_0 = arith.constant 0 : i32
    %c0_i32_1 = arith.constant 0 : i32
    return %arg1, %c0_i32, %c0_i32_0 : i32, i32, i32
  }
  func.func @transform_12(%arg0: i32, %arg1: i32) -> (i32, i32, i32) {
    %c0_i32 = arith.constant 0 : i32
    %c0_i32_0 = arith.constant 0 : i32
    %c0_i32_1 = arith.constant 0 : i32
    return %arg1, %c0_i32, %c0_i32_0 : i32, i32, i32
  }
  func.func @transform_13(%arg0: i32, %arg1: i32) -> (i32, i32, i32) {
    %c0_i32 = arith.constant 0 : i32
    %c0_i32_0 = arith.constant 0 : i32
    %c0_i32_1 = arith.constant 0 : i32
    return %arg1, %c0_i32, %c0_i32_0 : i32, i32, i32
  }
  func.func @transform_14(%arg0: i32, %arg1: i32) -> (i32, i32) {
    %c0_i32 = arith.constant 0 : i32
    %c0_i32_0 = arith.constant 0 : i32
    %c0_i32_1 = arith.constant 0 : i32
    return %c0_i32, %c0_i32_0 : i32, i32
  }
  func.func @transform_15(%arg0: i32, %arg1: i32) -> (i32, i32) {
    %c0_i32 = arith.constant 0 : i32
    %c0_i32_0 = arith.constant 0 : i32
    %c0_i32_1 = arith.constant 0 : i32
    return %c0_i32, %c0_i32_0 : i32, i32
  }
  func.func @transform_16(%arg0: i32, %arg1: i32) -> (i32, i32) {
    %c0_i32 = arith.constant 0 : i32
    %c0_i32_0 = arith.constant 0 : i32
    %c0_i32_1 = arith.constant 0 : i32
    return %c0_i32, %c0_i32_0 : i32, i32
  }
  func.func @transform_17(%arg0: i32, %arg1: i32) -> (i32, i32) {
    %c0_i32 = arith.constant 0 : i32
    %c0_i32_0 = arith.constant 0 : i32
    %c0_i32_1 = arith.constant 0 : i32
    return %c0_i32, %c0_i32_0 : i32, i32
  }
  func.func @transform_18(%arg0: i32, %arg1: i32) -> (i32, i32) {
    %c0_i32 = arith.constant 0 : i32
    %c0_i32_0 = arith.constant 0 : i32
    %c0_i32_1 = arith.constant 0 : i32
    return %c0_i32, %c0_i32_0 : i32, i32
  }
  func.func @transform_19(%arg0: i32, %arg1: i32) -> (i32, i32) {
    %c0_i32 = arith.constant 0 : i32
    %c0_i32_0 = arith.constant 0 : i32
    %c0_i32_1 = arith.constant 0 : i32
    return %c0_i32, %c0_i32_0 : i32, i32
  }
  func.func @transform_20(%arg0: i32, %arg1: i32) -> (i32, i32, i32) {
    %c0_i32 = arith.constant 0 : i32
    %c0_i32_0 = arith.constant 0 : i32
    %c0_i32_1 = arith.constant 0 : i32
    return %arg0, %c0_i32, %c0_i32_0 : i32, i32, i32
  }
}

</mosaic_0001>

<bundles_post_ra>
// kernel: tpu_custom_call.1
= control target key start
LH: loop header
LB: loop body
LE: loop exit
PB: predicated region body
PF: predicated region fallthrough
CT: control target
= control target key end

     0   :  { %s4247_s0 = inlined_call_operand.vmem [shape: f32[2,8,16], index: 0, kind: input, shape index: {}]   ;;  %s4248_s1 = inlined_call_operand.vmem [shape: f32[2,1,16], index: 1, kind: input, shape index: {}]   ;;  %s4249_s2 = inlined_call_operand.vmem [shape: bf16[2,16,32], index: 2, kind: input, shape index: {}]   ;;  %s4250_s3 = inlined_call_operand.vmem [shape: bf16[2,16,32], index: 3, kind: input, shape index: {}]   ;;  %s4251_s4 = inlined_call_operand.vmem [shape: f32[2,4,32], index: 4, kind: input, shape index: {}]   ;;  %s4252_s5 = inlined_call_operand.vmem [shape: f32[2,1,32], index: 5, kind: input, shape index: {}]   ;;  %s4253_s6 = inlined_call_operand.vmem [shape: bf16[2,32,8], index: 6, kind: input, shape index: {}]   ;;  %s4254_s7 = inlined_call_operand.vmem [shape: bf16[2,32,16], index: 7, kind: input, shape index: {}]   ;;  %s4255_s8 = inlined_call_operand.vmem [shape: bf16[2,32,16], index: 8, kind: input, shape index: {}]   ;;  %s4256_s9 = inlined_call_operand.vmem [shape: bf16[2,8,32], index: 9, kind: input, shape index: {}]   ;;  %s4257_s10 = inlined_call_operand.vmem [shape: f32[2,1,32], index: 10, kind: input, shape index: {}]   ;;  %s4258_s11 = inlined_call_operand.vmem [shape: f32[2,1,512], index: 11, kind: input, shape index: {}]   ;;  %s4259_s12 = inlined_call_operand.vmem [shape: f32[2,1,32], index: 12, kind: input, shape index: {}]   ;;  %s4260_s13 = inlined_call_operand.vmem [shape: bf16[2,32,16], index: 13, kind: input, shape index: {}]   ;;  %s4261_s14 = inlined_call_operand.vmem [shape: f32[1,16], index: 14, kind: input, shape index: {}]   ;;  %s4262_s15 = inlined_call_operand.vmem [shape: bf16[16,128], index: 15, kind: input, shape index: {}]   ;;  %s4263_s16 = inlined_call_operand.vmem [shape: f32[1,128], index: 16, kind: input, shape index: {}]   ;;  %s4264_s17 = inlined_call_operand.vmem [shape: bf16[32,512], index: 17, kind: input, shape index: {}]   ;;  %s4265_s18 = inlined_call_operand.vmem [shape: bf16[16,512], index: 18, kind: input, shape index: {}]   ;;  %s4266_s19 = inlined_call_operand.vmem [shape: bf16[512,32], index: 19, kind: input, shape index: {}]   ;;  %s4267_s20 = inlined_call_operand.hbm [shape: f32[2,8,128], index: 20, kind: output, shape index: {}]  }
   0x1   :  { %4286 = sst [smem:[#allocation22_spill]] %s4247_s0 }
   0x2   :  { %4287 = sst [smem:[#allocation23_spill]] %s4248_s1 }
   0x3   :  { %4288 = sst [smem:[#allocation24_spill]] %s4249_s2 }
   0x4   :  { %4289 = sst [smem:[#allocation25_spill]] %s4250_s3 }
   0x5   :  { %4290 = sst [smem:[#allocation26_spill]] %s4251_s4 }
   0x6   :  { %4291 = sst [smem:[#allocation27_spill]] %s4253_s6 }
   0x7   :  { %4292 = sst [smem:[#allocation28_spill]] %s4254_s7 }
   0x8   :  { %4293 = sst [smem:[#allocation29_spill]] %s4259_s12 }
   0x9   :  { %4294 = sst [smem:[#allocation30_spill]] %s4260_s13 }
   0xa   :  { %4295 = sst [smem:[#allocation31_spill]] %s4261_s14 }
   0xb   :  { %4296 = sst [smem:[#allocation32_spill]] %s4262_s15 }
   0xc   :  { %4297 = sst [smem:[#allocation33_spill]] %s4263_s16 }
   0xd   :  { %4298 = sst [smem:[#allocation34_spill]] %s4264_s17 }
   0xe   :  { %4299 = sst [smem:[#allocation35_spill]] %s4265_s18 }
   0xf   :  { %4300 = sst [smem:[#allocation36_spill]] %s4266_s19 }
  0x10   :  { %4301 = sst [smem:[#allocation37_spill]] %s4267_s20 }
  0x11   :  { %25 = vsyncpa [#allocation7], 0 }
  0x12   :  { %27 = vsyncpa [#allocation7 + $0x1], 0  ;;  %s3578_s1 = smov 0   ;;  %s3580_s22 = smov 0  }
  0x13   :  { %s3582_s23 = smov 0   ;;  %s3584_s24 = smov 0  }
  0x14   :  { %s3586_s2 = smov 0   ;;  %s3588_s25 = smov 0  }
  0x15   :  { %s3590_s3 = smov 0   ;;  %s3592_s26 = smov 0  }
  0x16 LB: > { %4302 = sst [smem:[#allocation9_spill]] %s3436_s1  ;;  %s2982_s27 = sadd.s32 4294967295, %s3464_s26   ;;  %s3464_s26 = sphi %s3592_s26, %s33_s26   ;;  %s3460_s3 = sphi %s3590_s3, %s4357_s3   ;;  %s3456_s25 = sphi %s3588_s25, %s4356_s25   ;;  %s3452_s2 = sphi %s3586_s2, %s4355_s2   ;;  %s3448_s24 = sphi %s3584_s24, %s4354_s24   ;;  %s3444_s23 = sphi %s3582_s23, %s4353_s23   ;;  %s3440_s22 = sphi %s3580_s22, %s4352_s22   ;;  %s3436_s1 = sphi %s3578_s1, %s4351_s1  }
  0x17   : > { %4303 = sst [smem:[#allocation10_spill]] %s3440_s22  ;;  %s2983_s28 = sadd.s32 4294967294, %s3464_s26  }
  0x18   : > { %4304 = sst [smem:[#allocation11_spill]] %s3444_s23  ;;  %s42_s4 = sadd.s32 1, %s3456_s25 }
  0x19   : > { %4305 = sst [smem:[#allocation12_spill]] %s3448_s24  ;;  %p43_p0 = scmp.ge.s32.totalorder %s42_s4, 2 }
  0x1a   : > { %4306 = sst [smem:[#allocation13_spill]] %s3452_s2  ;;  %s45_s29 = sadd.s32 1, %s3460_s3 }
  0x1b   : > { %4307 = sst [smem:[#allocation14_spill]] %s3456_s25  ;;  %p552_p1 = scmp.ne.s32.totalorder %s3444_s23, %s3440_s22 }
  0x1c   : > { %4308 = sst [smem:[#allocation15_spill]] %s3460_s3  ;;  %p553_p2 = scmp.eq.s32.totalorder %s2982_s27, 3 }
  0x1d   : > { %4309 = sst [smem:[#allocation16_spill]] %s3464_s26  ;;  %s4359_s4 = smov (%p43_p0, %s42_s4), 0 }
  0x1e   : > { %4310 = sst [smem:[#allocation17_spill]] %s4359_s4  ;;  %s4361_s29 = smov (!%p43_p0, %s45_s29), %s3460_s3 }
  0x1f   : > { %p3627_p3 = por %p553_p2, %p552_p1  ;;  %p558_p4 = scmp.ne.s32.totalorder %s3440_s22, %s3436_s1 }
  0x20   : > { %p47_p5 = scmp.ge.s32.totalorder %s4361_s29, 2  ;;  %p559_p6 = scmp.eq.s32.totalorder %s2983_s28, 3 }
  0x21   : > { %s4311_s30 = scalar_select %p3627_p3, 1, 0 }
  0x22   : > { %p2986_p7 = scmp.ge.s32.totalorder %s3464_s26, 1  ;;  %p695_p8 = scmp.lt.s32.totalorder %s3464_s26, 5 }
  0x23   : > { %4312 = sst [smem:[#allocation18_spill]] %s4311_s30  ;;  %s4363_s29 = smov (%p47_p5, %s4361_s29), 0 }
  0x24   : > { %4313 = sst [smem:[#allocation19_spill]] %s4363_s29  ;;  %p3637_p9 = por %p559_p6, %p558_p4 }
  0x25   : > { %p696_p10 = pnand %p2986_p7, %p695_p8  ;;  %s539_s21 = ssub.s32 %s3460_s3, %s4363_s29 }
  0x26   : > { %s4314_s0 = scalar_select %p3637_p9, 1, 0 }
  0x27   : > { %s542_s27 = sadd.s32 1, %s3444_s23  ;;  %p540_p11 = scmp.eq.s32.totalorder %s539_s21, 0 }
  0x28   : > { %4315 = sst [smem:[#allocation20_spill]] %s4314_s0  ;;  %699 = sbr.rel (%p696_p10) target bundleno = 2008 (0x7d8), region = 100 }
  0x29   : > { %s3645_s4 = scalar_select %p540_p11, %s3444_s23, %s542_s27  }
  0x2a   : > { %s4276_s28 = sand.u32 (!%p696_p10), 1, %s3440_s22   ;;  %p806_p12 = scmp.lt.s32.totalorder (!%p696_p10), %s3452_s2, 1 }
  0x2b   : > { %4316 = sst [smem:[#allocation21_spill]] %s3645_s4  ;;  %s3651_s25 = sshll.u32 (!%p696_p10), %s4276_s28, 3 }
  0x2c   : > { %p810_p13 = scmp.lt.s32.totalorder (!%p696_p10), %s3448_s24, 1  ;;  %s4317_s3 = sld [smem:[#allocation22_spill]] (!%p696_p10) }
  0x2d   : > { %s807_s0 = scalar_select %p806_p12, %s3452_s2, 1 }
  0x2e   : > { %s3656_s1 = scalar_select %p810_p13, %s3448_s24, 1 }
  0x2f   : > { %s2988_s21 = sshll.u32 %s807_s0, 3  ;;  %s4319_s14 = sld [smem:[#allocation24_spill]] }
  0x30   : > { %s3083_s30 = sshll.u32 %s3656_s1, 3  ;;  %s3667_s22 = sshll.u32 %s3656_s1, 2 }
  0x31   : > { %s4320_s29 = sld [smem:[#allocation25_spill]]  ;;  %s3085_s17 = sshll.u32 %s3656_s1, 4 }
  0x32   : > { %s809_s4 = scalar_lea.vmem %s4317_s3, %s2988_s21  ;;  %s4322_s6 = sld [smem:[#allocation27_spill]] }
  0x33   : > { %s4323_s7 = sld [smem:[#allocation28_spill]]  ;;  %s3701_s3 = scalar_lea.vmem %s4255_s8, %s3085_s17 }
  0x34   : > { %s851_s13 = scalar_lea.vmem %s4257_s10, %s3656_s1  ;;  %s855_s12 = scalar_lea.vmem %s4258_s11, %s3667_s22 }
  0x35   : > { %s817_s0 = scalar_lea.vmem %s4319_s14, %s3083_s30  ;;  %s4324_s20 = sld [smem:[#allocation29_spill]] }
  0x36   : > { %s805_s18 = scalar_lea.vmem [#allocation6], %s3651_s25 }
  0x37   : > { %s822_s27 = scalar_lea.vmem %s4320_s29, %s3083_s30  ;;  %s4326_s29 = sld [smem:[#allocation12_spill]] }
  0x38   : > { %s3691_s14 = scalar_lea.vmem %s4322_s6, %s3085_s17  ;;  %s4325_s6 = sld [smem:[#allocation30_spill]] }
  0x39   : > { %s3696_s30 = scalar_lea.vmem %s4323_s7, %s3085_s17 }
  0x3b   : > { %s858_s23 = scalar_lea.vmem %s4324_s20, %s3656_s1 }
  0x3d   : > { %p3004_p0 = scmp.ne.s32.totalorder %s4326_s29, 0 }
  0x3e   : > { %s3718_s7 = scalar_lea.vmem %s4325_s6, %s3085_s17 }
  0x3f   : > { %868 = sbr.rel (%p3004_p0) target bundleno = 70 (0x46), region = 104 }
  0x44   : > { %v869_v0 = vld [vmem:[%s809_s4] sm:$0xff]  ;;  %vm870_vm0 = vcmask 130048  }
  0x45   : > { %871 = vst.msk [vmem:[#allocation2] sm:$0xff] %vm870_vm0, %v869_v0 }
  0x46 PF: > { %vm875_vm1 = vcmask 130048   ;;  %v3286_v4 = vld [vmem:[%s817_s0] sm:$0xff]   ;;  %v3466_v6 = vmov 0.0   ;;  %vm3467_vm2 = vmmov 0   ;;  %s4327_s20 = sld [smem:[#allocation23_spill]]  ;;  %v3288_v15 = vld [vmem:[%s3691_s14 + $0x8] sm:$0xff]   ;;  %v997_v19 = vlaneseq  ;;  %s4331_s26 = scalar_lea.vmem %s4252_s5, %s3656_s1 }
  0x47   : > { %v3287_v5 = vld [vmem:[%s822_s27] sm:$0xff]   ;;  %3153 = vmatprep.subr.bf16.mxu0 %v3466_v6  ;;  %3159 = vmatprep.subr.bf16.mxu1 %v3466_v6  ;;  %v3289_v16 = vld [vmem:[%s3696_s30 + $0x8] sm:$0xff]   ;;  %s4329_s16 = sld [smem:[#allocation26_spill]]  ;;  %vm995_vm3 = vcmask 1042432   ;;  %vm1011_vm4 = vcmask 1046528   ;;  %vm1025_vm5 = vcmask 1045504   ;;  %s4332_s2 = scalar_lea.vmem %s4256_s9, %s3667_s22 }
  0x48   : > { %3154 = vmatpush3.bf16.msra.mxu0 %v3286_v4  ;;  %3160 = vmatpush3.bf16.msra.mxu1 %v3287_v5  ;;  %v3290_v17 = vld [vmem:[%s3691_s14] sm:$0xff]   ;;  %v3751_v20 = vshrl.u32 %v997_v19, 7  ;;  %vm1039_vm6 = vcmask 1044480   ;;  %vm1245_vm7 = vcmask 1043456   ;;  %vm1076_vm8 = vcmask 261120   ;;  %v3292_v4 = vld [vmem:[%s3701_s3 + $0x8] sm:$0xff]  }
  0x49   : > { %3155 = vmatprep.mubr.msk.bf16.mxu0 %vm3467_vm2, %v3466_v6  ;;  %3161 = vmatprep.mubr.msk.bf16.mxu1 %vm3467_vm2, %v3466_v6  ;;  %v3291_v18 = vld [vmem:[%s3696_s30] sm:$0xff]   ;;  %vm1241_vm9 = vcmask 64512   ;;  %s4333_s19 = sld [smem:[#allocation34_spill]]  ;;  %vm3960_vm10 = vcmp.lt.s32.totalorder %v997_v19, 512  ;;  %vm2263_vm11 = vcmask 1041409   ;;  %vm2266_vm12 = vcmask 1042434  }
  0x4a   : > { %3165 = vmatprep.subr.bf16.mxu0 %v3466_v6  ;;  %3173 = vmatprep.subr.bf16.mxu1 %v3466_v6  ;;  %v3754_v21 = vsub.s32 1, %v3751_v20  ;;  %v3757_v22 = vsub.s32 2, %v3751_v20  ;;  %v3765_v24 = vsub.s32 3, %v3751_v20  ;;  %v3768_v25 = vsub.s32 0, %v3751_v20  ;;  %v3010_v58 = vld [vmem:[%s4331_s26] ss:$0 sm:$0xff] }
  0x4b   : > { %s4334_s15 = sld [smem:[#allocation35_spill]]  ;;  %vm2269_vm13 = vcmask 1043459   ;;  %vm2272_vm14 = vcmask 1044484   ;;  %vm2275_vm15 = vcmask 1045509   ;;  %vm2278_vm0 = vcmask 1046534  }
  0x4c   : > { %v872_v1 = vld [vmem:[#allocation2] sm:$0xff]  ;;  %s4328_s4 = scalar_lea.vmem %s4327_s20, %s3656_s1  ;;  %s4335_s30 = sld [smem:[#allocation36_spill]] }
  0x4d   : > { %v874_v2 = vmul.f32 %v872_v1, %v872_v1  ;;  %v3005_v11 = vld [vmem:[%s4328_s4] ss:$0 sm:$0xff]  ;;  %s4330_s14 = scalar_lea.vmem %s4329_s16, %s3667_s22 }
  0x4e   : > { %v991_v23 = vld [vmem:[%s4330_s14] sm:$0xf] }
  0x4f   : > { %v876_v3 = vsel %vm875_vm1, %v874_v2, 0.0  ;;  %v1006_v26 = vrot.slane %v991_v23, %v3754_v21  ;;  %v1020_v27 = vrot.slane %v991_v23, %v3757_v22  ;;  %v1034_v29 = vrot.slane %v991_v23, %v3765_v24 }
  0x50   : > { %877 = vadd.xlane.f32.xlu0 %v876_v3  ;;  %v1000_v35 = vrot.slane %v991_v23, %v3768_v25  ;;  %v1233_v3 = vld [vmem:[%s4332_s2] sm:$0xf] }
  0xd9   : > { %v878_v7 = vpop.xlane.xlu0 %877 }
  0xda   : > { %v880_v8 = vmul.f32 0.0625, %v878_v7  ;;  %v1247_v7 = vsel %vm1245_vm7, %v1233_v3, 0  ;;  %v3318_v3 = vld [vmem:[%s4335_s30 + $0x30] sm:$0xff]  }
  0xdc   : > { %v881_v9 = vadd.f32 1e-05, %v880_v8  ;;  %v3293_v8 = vld [vmem:[%s3701_s3] sm:$0xff]  }
  0xde   : > { %3346 = vrsqrt.f32 %v881_v9 }
  0xeb   : > { %v3347_v10 = vpop.eup %3346 }
  0xec   : > { %v883_v12 = vmul.f32 %v3347_v10, %v872_v1 }
  0xee   : > { %v890_v13 = vmul.f32 %v3005_v11, %v883_v12 }
  0xf0   : > { %v891_v14 = vpack.c.bf16 %v890_v13, %v890_v13 }
  0xf2   : > { %3156 = vmatmul.mubr.msk.bf16.vlgmr.msra.gmra.mxu0 %vm875_vm1, %v891_v14  ;;  %3162 = vmatmul.mubr.msk.bf16.vlgmr.msra.gmra.mxu1 %vm875_vm1, %v891_v14 }
  0xf3   : > { %3169 = vmatprep.mubr.msk.bf16.mxu0 %vm3467_vm2, %v3466_v6  ;;  %3177 = vmatprep.mubr.msk.bf16.mxu1 %vm3467_vm2, %v3466_v6 }
  0xf4   : > { %3166 = vmatpush3.bf16.msra.mxu0 %v3288_v15  ;;  %3174 = vmatpush3.bf16.msra.mxu1 %v3289_v16 }
  0xf5   : > { %3167 = vmatprep.subr.bf16.mxu0 %v3466_v6  ;;  %3175 = vmatprep.subr.bf16.mxu1 %v3466_v6 }
  0xf8   : > { %3168 = vmatpush3.bf16.msra.mxu0 %v3290_v17  ;;  %3176 = vmatpush3.bf16.msra.mxu1 %v3291_v18 }
  0xf9   : > { %3181 = vmatprep.subr.bf16.mxu0 %v3466_v6  ;;  %3189 = vmatprep.subr.bf16.mxu1 %v3466_v6 }
 0x1b2   : > { %v937_v28 = vpop.f32.mrf.mxu0  ;;  %v3773_v30 = vpop.f32.mrf.mxu1 }
 0x1b3   : > { %v993_v31 = vrot.slane %v937_v28, 5 }
 0x1b4   : > { %v3157_v32 = vpop.f32.mrf.mxu0  ;;  %v3163_v33 = vpop.f32.mrf.mxu1 }
 0x1b5   : > { %v996_v34 = vsel %vm995_vm3, 0.0, %v993_v31  ;;  %v1008_v36 = vmul.f32 %v1006_v26, %v993_v31  ;;  %v1022_v37 = vmul.f32 %v1020_v27, %v993_v31  ;;  %v1036_v41 = vmul.f32 %v1034_v29, %v993_v31  ;;  %v3299_v31 = vld [vmem:[%s4333_s19 + $0x2c] ss:$16 sps:$4 sm:$0xff]   ;;  %v3294_v32 = vld [vmem:[%s4333_s19 + $0x20] ss:$16 sps:$4 sm:$0xff]  }
 0x1b6   : > { %v1007_v38 = vmul.f32 %v1006_v26, %v996_v34  ;;  %v1021_v39 = vmul.f32 %v1020_v27, %v996_v34  ;;  %v1035_v40 = vmul.f32 %v1034_v29, %v996_v34  ;;  %v940_v42 = vpop.f32.mrf.mxu0  ;;  %v988_v43 = vpop.f32.mrf.mxu1  ;;  %v1001_v50 = vmul.f32 %v1000_v35, %v996_v34  ;;  %v3296_v29 = vld [vmem:[%s4333_s19 + $0x24] ss:$16 sps:$4 sm:$0xff]   ;;  %v3297_v33 = vld [vmem:[%s4333_s19 + $0x28] ss:$16 sps:$4 sm:$0xff]   ;;  %v3305_v35 = vld [vmem:[%s4333_s19 + $0xc] ss:$16 sps:$4 sm:$0xff]  }
 0x1b7   : > { %v1013_v44 = vrot.slane %v1008_v36, 1  ;;  %v1027_v47 = vrot.slane %v1022_v37, 2  ;;  %v1041_v53 = vrot.slane %v1036_v41, 3  ;;  %v3302_v34 = vld [vmem:[%s4333_s19 + $0x4] ss:$16 sps:$4 sm:$0xff]   ;;  %vm2281_vm3 = vcmask 1047559  }
 0x1b8   : > { %v1012_v45 = vrot.slane %v1007_v38, 1  ;;  %v1026_v46 = vrot.slane %v1021_v39, 2  ;;  %v3158_v48 = vpop.f32.mrf.mxu0  ;;  %v3164_v49 = vpop.f32.mrf.mxu1  ;;  %v1040_v52 = vrot.slane %v1035_v40, 3  ;;  %v3300_v36 = vld [vmem:[%s4333_s19] ss:$16 sps:$4 sm:$0xff]   ;;  %v3468_v38 = vmov 0  }
 0x1b9   : > { %v3303_v37 = vld [vmem:[%s4333_s19 + $0x8] ss:$16 sps:$4 sm:$0xff]   ;;  %v3308_v39 = vld [vmem:[%s4334_s15 + $0x4] ss:$16 sps:$4 sm:$0xff]   ;;  %v3311_v40 = vld [vmem:[%s4334_s15 + $0xc] ss:$16 sps:$4 sm:$0xff]  }
 0x1ba   : > { %v1014_v51 = vsel %vm1011_vm4, %v1012_v45, %v1013_v44  ;;  %v1028_v55 = vsel %vm1025_vm5, %v1026_v46, %v1027_v47  ;;  %v1042_v57 = vsel %vm1039_vm6, %v1040_v52, %v1041_v53  ;;  %v3020_v41 = vld [vmem:[%s851_s13] ss:$0 sm:$0xff] }
 0x1bb   : > { %v1016_v54 = vadd.f32 %v1014_v51, %v1001_v50 }
 0x1bd   : > { %v1030_v56 = vadd.f32 %v1028_v55, %v1016_v54 }
 0x1bf   : > { %v1044_v59 = vadd.f32 %v1042_v57, %v1030_v56  ;;  %v3306_v57 = vld [vmem:[%s4334_s15] ss:$16 sps:$4 sm:$0xff]  }
 0x1c1   : > { %v1052_v60 = vadd.f32 %v3010_v58, %v1044_v59  ;;  %v3309_v58 = vld [vmem:[%s4334_s15 + $0x8] ss:$16 sps:$4 sm:$0xff]  }
 0x1c3   : > { %v1053_v61 = vsub.f32 0.0, %v1052_v60 }
 0x1c5   : > { %v1054_v62 = vmul.f32 1.442695, %v1053_v61  ;;  %v3313_v61 = vld [vmem:[%s4335_s30 + $0xf8] sm:$0xff]  }
 0x1c7   : > { %3348 = vpow2.f32 %v1054_v62  ;;  %v3314_v62 = vld [vmem:[%s4335_s30 + $0x38] sm:$0xff]  }
 0x1d4   : > { %v3349_v63 = vpop.eup %3348 }
 0x1d5   : > { %v1056_v0 = vadd.f32 1.0, %v3349_v63  ;;  %v3315_v63 = vld [vmem:[%s4335_s30 + $0xb8] sm:$0xff]  }
 0x1d7   : > { %3350 = vrcp.f32 %v1056_v0  ;;  %v3316_v0 = vld [vmem:[%s4335_s30 + $0x70] sm:$0xff]  }
 0x1e4   : > { %v3351_v1 = vpop.eup %3350 }
 0x1e5   : > { %v3781_v2 = vmul.f32 %v3351_v1, %v1052_v60  ;;  %v3312_v60 = vld [vmem:[%s4335_s30 + $0x78] sm:$0xff]   ;;  %v3317_v1 = vld [vmem:[%s4335_s30 + $0xf0] sm:$0xff]  }
 0x1e7   : > { %v1059_v5 = vpack.c.bf16 %v3781_v2, %v3781_v2 }
 0x1e9   : > { %3170 = vmatmul.mubr.msk.bf16.vlgmr.msra.gmra.mxu0 %vm1076_vm8, %v1059_v5  ;;  %3178 = vmatmul.mubr.msk.bf16.vlgmr.msra.gmra.mxu1 %vm1076_vm8, %v1059_v5 }
 0x1ea   : > { %3182 = vmatpush3.bf16.msra.mxu0 %v3292_v4  ;;  %3185 = vmatprep.mubr.msk.bf16.mxu0 %vm3467_vm2, %v3466_v6  ;;  %v3319_v4 = vld [vmem:[%s4335_s30 + $0xb0] sm:$0xff]  }
 0x1eb   : > { %3183 = vmatprep.subr.bf16.mxu0 %v3466_v6  ;;  %3190 = vmatpush3.bf16.msra.mxu1 %v1247_v7  ;;  %v3321_v7 = vld [vmem:[%s4335_s30 + $0xe8] sm:$0xff]  }
 0x1ec   : > { %3191 = vmatprep.mubr.msk.bf16.mxu1 %vm3467_vm2, %v3466_v6  ;;  %1406 = vmatprep.subr.bf16.mxu1 %v3299_v31  ;;  %v3338_v31 = vld [vmem:[%s4335_s30 + $0x8] sm:$0xff]  }
 0x1ee   : > { %3184 = vmatpush3.bf16.msra.mxu0 %v3293_v8  ;;  %v3322_v8 = vld [vmem:[%s4335_s30 + $0x28] sm:$0xff]  }
 0x1ef   : > { %1363 = vmatprep.subr.bf16.mxu0 %v3296_v29  ;;  %v3337_v29 = vld [vmem:[%s4335_s30 + $0xc8] sm:$0xff]  }
 0x1f1   : > { %3186 = vmatmul.mubr.msk.bf16.vlgmr.msra.gmra.mxu0 %vm1076_vm8, %v1059_v5  ;;  %v3320_v5 = vld [vmem:[%s4335_s30 + $0x68] sm:$0xff]  }
 0x1f2   : > { %1364 = vmatpush1.bf16.msra.mxu0 %v3294_v32  ;;  %1383 = vmatprep.mubr.bf16.mxu0 %v3468_v38  ;;  %v3339_v32 = vld [vmem:[%s4335_s30 + $0x88] sm:$0xff]  }
 0x1f3   : > { %1365 = vmatprep.subr.bf16.mxu0 %v3302_v34  ;;  %v3341_v34 = vld [vmem:[%s4335_s30 + $0xc0] sm:$0xff]  }
 0x1f6   : > { %1366 = vmatpush1.bf16.msra.mxu0 %v3300_v36  ;;  %v3343_v36 = vld [vmem:[%s4335_s30 + $0x80] sm:$0xff]  }
 0x1f7   : > { %1479 = vmatprep.subr.bf16.mxu0 %v3308_v39 }
 0x2a9   : > { %v1114_v9 = vpop.f32.mrf.mxu0  ;;  %v1170_v10 = vpop.f32.mrf.mxu1 }
 0x2aa   : > { %v1232_v11 = vpack.c.bf16 %v1114_v9, %v1114_v9  ;;  %v3323_v9 = vld [vmem:[%s4335_s30 + $0xa8] sm:$0xff]  }
 0x2ab   : > { %v3171_v12 = vpop.f32.mrf.mxu0  ;;  %v3179_v13 = vpop.f32.mrf.mxu1 }
 0x2ac   : > { %3192 = vmatmul.mubr.msk.bf16.vlgmr.msra.gmra.mxu1 %vm1241_vm9, %v1232_v11  ;;  %v3325_v11 = vld [vmem:[%s4335_s30 + $0xe0] sm:$0xff]  }
 0x2ad   : > { %v1117_v14 = vpop.f32.mrf.mxu0  ;;  %v1173_v15 = vpop.f32.mrf.mxu1  ;;  %1407 = vmatpush1.bf16.msra.mxu1 %v3297_v33  ;;  %1426 = vmatprep.mubr.bf16.mxu1 %v3468_v38  ;;  %v3326_v12 = vld [vmem:[%s4335_s30 + $0x20] sm:$0xff]  }
 0x2ae   : > { %1408 = vmatprep.subr.bf16.mxu1 %v3305_v35  ;;  %v3327_v13 = vld [vmem:[%s4335_s30 + $0xa0] sm:$0xff]   ;;  %v3328_v14 = vld [vmem:[%s4335_s30 + $0x58] sm:$0xff]  }
 0x2af   : > { %v3172_v16 = vpop.f32.mrf.mxu0  ;;  %v3180_v17 = vpop.f32.mrf.mxu1  ;;  %v3329_v15 = vld [vmem:[%s4335_s30 + $0xd8] sm:$0xff]   ;;  %v3340_v33 = vld [vmem:[%s4335_s30 + $0x40] sm:$0xff]  }
 0x2b0   : > { %v3330_v16 = vld [vmem:[%s4335_s30 + $0x18] sm:$0xff]   ;;  %v3342_v35 = vld [vmem:[%s4335_s30] sm:$0xff]  }
 0x2b1   : > { %v1226_v18 = vpop.f32.mrf.mxu0  ;;  %1409 = vmatpush1.bf16.msra.mxu1 %v3303_v37  ;;  %v3331_v17 = vld [vmem:[%s4335_s30 + $0x98] sm:$0xff]   ;;  %v1551_v37 = vld [vmem:[%s855_s12] sm:$0xf] }
 0x2b2   : > { %v1437_v23 = vpack.c.bf16 %v1226_v18, %v1170_v10  ;;  %1522 = vmatprep.subr.bf16.mxu1 %v3311_v40  ;;  %v3324_v10 = vld [vmem:[%s4335_s30 + $0x60] sm:$0xff]   ;;  %v3332_v18 = vld [vmem:[%s4335_s30 + $0x50] sm:$0xff]   ;;  %v1564_v39 = vrot.slane %v1551_v37, %v3757_v22  ;;  %v1560_v40 = vrot.slane %v1551_v37, %v3754_v21 }
 0x2b3   : > { %v3187_v26 = vpop.f32.mrf.mxu0 }
 0x2b4   : > { %v3334_v26 = vld [vmem:[%s4335_s30 + $0x10] sm:$0xff]  }
 0x2b5   : > { %v1229_v27 = vpop.f32.mrf.mxu0 }
 0x2b6   : > { %v3335_v27 = vld [vmem:[%s4335_s30 + $0x90] sm:$0xff]  }
 0x2b7   : > { %v3188_v28 = vpop.f32.mrf.mxu0 }
 0x2b8   : > { %v3336_v28 = vld [vmem:[%s4335_s30 + $0x48] sm:$0xff]  }
 0x36c   : > { %v1283_v42 = vpop.f32.mrf.mxu1 }
 0x36d   : > { %v1284_v43 = vadd.f32 %v3020_v41, %v1283_v42  ;;  %v1568_v41 = vrot.slane %v1551_v37, %v3765_v24 }
 0x36e   : > { %v3193_v44 = vpop.f32.mrf.mxu1 }
 0x36f   : > { %v1290_v45 = vand.u32 2147483647, %v1284_v43  ;;  %v1289_v53 = vmax.f32 %v1284_v43, 0.0 }
 0x370   : > { %v1286_v46 = vpop.f32.mrf.mxu1 }
 0x371   : > { %v1291_v47 = vsub.f32 0.0, %v1290_v45  ;;  %v3469_v46 = vmov 1966171168  }
 0x372   : > { %v3194_v48 = vpop.f32.mrf.mxu1 }
 0x373   : > { %v1292_v49 = vmul.f32 1.442695, %v1291_v47  ;;  %v1598_v47 = vunpack.c.l.s4 %v3469_v46 }
 0x375   : > { %3352 = vpow2.f32 %v1292_v49 }
 0x382   : > { %v3353_v50 = vpop.eup %3352 }
 0x383   : > { %v1294_v51 = vadd.f32 1.0, %v3353_v50 }
 0x385   : > { %3354 = vlog2.f32 %v1294_v51 }
 0x392   : > { %v3355_v52 = vpop.eup %3354 }
 0x393   : > { %v1296_v54 = vmul.f32 0.6931472, %v3355_v52 }
 0x395   : > { %v1297_v55 = vadd.f32 %v1296_v54, %v1289_v53 }
 0x397   : > { %v1298_v56 = vmul.f32 %v1297_v55, %v3781_v2 }
 0x399   : > { %v1299_v59 = vpack.c.bf16 %v1298_v56, %v1297_v55 }
 0x39b   : > { %3030 = vmatmul.mubr.msk.bf16.vlgmr.msra.gmra.mxu0 %vm1076_vm8, %v1299_v59  ;;  %3031 = vmatmul.mubr.msk.bf16.vlgmr.msra.gmra.mxu1 %vm1076_vm8, %v1299_v59 }
 0x39c   : > { %1480 = vmatpush1.bf16.msra.mxu0 %v3306_v57  ;;  %1523 = vmatpush1.bf16.msra.mxu1 %v3309_v58  ;;  %v1599_v58 = vunpack.c.0.s8 %v1598_v47 }
 0x39d   : > { %1497 = vmatprep.mubr.bf16.mxu0 %v3468_v38  ;;  %1540 = vmatprep.mubr.bf16.mxu1 %v3468_v38  ;;  %v1556_v38 = vrot.slane %v1551_v37, %v3768_v25 }
 0x39e   : > { %3104 = vmatprep.subr.bf16.mxu0 %v3312_v60  ;;  %3126 = vmatprep.subr.bf16.mxu1 %v3313_v61 }
 0x3a3   : > { %3036 = vmatmul.mubr.msk.bf16.vlgmr.msra.gmra.mxu0 %vm875_vm1, %v1437_v23  ;;  %3037 = vmatmul.mubr.msk.bf16.vlgmr.msra.gmra.mxu1 %vm875_vm1, %v1437_v23  ;;  %v3333_v23 = vld [vmem:[%s4335_s30 + $0xd0] sm:$0xff]  }
 0x3a4   : > { %3105 = vmatpush3.bf16.msra.mxu0 %v3314_v62  ;;  %3127 = vmatpush3.bf16.msra.mxu1 %v3315_v63  ;;  %v3953_v63 = vsub.s32 %v1599_v58, %v3751_v20 }
 0x3a5   : > { %3106 = vmatprep.subr.bf16.mxu0 %v3316_v0  ;;  %3128 = vmatprep.subr.bf16.mxu1 %v3317_v1 }
 0x3a8   : > { %3107 = vmatpush3.bf16.msra.mxu0 %v3318_v3  ;;  %3129 = vmatpush3.bf16.msra.mxu1 %v3319_v4 }
 0x3a9   : > { %3108 = vmatprep.subr.bf16.mxu0 %v3320_v5  ;;  %3130 = vmatprep.subr.bf16.mxu1 %v3321_v7 }
 0x3ac   : > { %3109 = vmatpush3.bf16.msra.mxu0 %v3322_v8  ;;  %3131 = vmatpush3.bf16.msra.mxu1 %v3323_v9 }
 0x3ad   : > { %3110 = vmatprep.subr.bf16.mxu0 %v3324_v10  ;;  %3132 = vmatprep.subr.bf16.mxu1 %v3325_v11 }
 0x3b0   : > { %3111 = vmatpush3.bf16.msra.mxu0 %v3326_v12  ;;  %3133 = vmatpush3.bf16.msra.mxu1 %v3327_v13 }
 0x3b1   : > { %3112 = vmatprep.subr.bf16.mxu0 %v3328_v14  ;;  %3134 = vmatprep.subr.bf16.mxu1 %v3329_v15 }
 0x3b4   : > { %3113 = vmatpush3.bf16.msra.mxu0 %v3330_v16  ;;  %3135 = vmatpush3.bf16.msra.mxu1 %v3331_v17 }
 0x3b5   : > { %3114 = vmatprep.subr.bf16.mxu0 %v3332_v18  ;;  %3136 = vmatprep.subr.bf16.mxu1 %v3333_v23 }
 0x3b8   : > { %3115 = vmatpush3.bf16.msra.mxu0 %v3334_v26  ;;  %3137 = vmatpush3.bf16.msra.mxu1 %v3335_v27 }
 0x3b9   : > { %3116 = vmatprep.subr.bf16.mxu0 %v3336_v28  ;;  %3138 = vmatprep.subr.bf16.mxu1 %v3337_v29 }
 0x3bc   : > { %3117 = vmatpush3.bf16.msra.mxu0 %v3338_v31  ;;  %3139 = vmatpush3.bf16.msra.mxu1 %v3339_v32 }
 0x3bd   : > { %3118 = vmatprep.subr.bf16.mxu0 %v3340_v33  ;;  %3140 = vmatprep.subr.bf16.mxu1 %v3341_v34 }
 0x3c0   : > { %3119 = vmatpush3.bf16.msra.mxu0 %v3342_v35  ;;  %3141 = vmatpush3.bf16.msra.mxu1 %v3343_v36 }
 0x3c1   : > { %3195 = vmatprep.subr.bf16.mxu0 %v3466_v6 }
 0x45b   : > { %v1385_v42 = vpop.f32.mrf.mxu0  ;;  %v1428_v43 = vpop.f32.mrf.mxu1 }
 0x45c   : > { %v1573_v44 = vmul.f32 %v1556_v38, %v1385_v42  ;;  %v1575_v45 = vmul.f32 %v1564_v39, %v1428_v43 }
 0x45d   : > { %v1387_v48 = vpop.f32.mrf.mxu0  ;;  %v1430_v49 = vpop.f32.mrf.mxu1 }
 0x45e   : > { %v1577_v50 = vmul.f32 1.442695, %v1573_v44  ;;  %v1581_v51 = vmul.f32 1.442695, %v1575_v45  ;;  %v1574_v52 = vmul.f32 %v1560_v40, %v1387_v48  ;;  %v1576_v53 = vmul.f32 %v1568_v41, %v1430_v49 }
 0x45f   : > { %v1389_v54 = vpop.f32.mrf.mxu0  ;;  %v1432_v55 = vpop.f32.mrf.mxu1 }
 0x460   : > { %3356 = vpow2.f32 %v1577_v50  ;;  %v1579_v56 = vmul.f32 1.442695, %v1574_v52  ;;  %v1583_v57 = vmul.f32 1.442695, %v1576_v53 }
 0x461   : > { %3358 = vpow2.f32 %v1581_v51  ;;  %v1391_v59 = vpop.f32.mrf.mxu0  ;;  %v1434_v60 = vpop.f32.mrf.mxu1 }
 0x462   : > { %3360 = vpow2.f32 %v1579_v56 }
 0x463   : > { %3362 = vpow2.f32 %v1583_v57  ;;  %v1499_v61 = vpop.f32.mrf.mxu0  ;;  %v1542_v62 = vpop.f32.mrf.mxu1 }
 0x464   : > { %v1585_v3 = vmul.f32 %v1499_v61, %v1389_v54  ;;  %v1587_v4 = vmul.f32 %v1542_v62, %v1432_v55 }
 0x465   : > { %v1501_v0 = vpop.f32.mrf.mxu0  ;;  %v1544_v1 = vpop.f32.mrf.mxu1 }
 0x466   : > { %v1586_v5 = vmul.f32 %v1501_v0, %v1391_v59  ;;  %v1588_v7 = vmul.f32 %v1544_v1, %v1434_v60 }
 0x467   : > { %v1503_v54 = vpop.f32.mrf.mxu0  ;;  %v1546_v55 = vpop.f32.mrf.mxu1 }
 0x468   : > { %v1685_v8 = vcombine.low %v1585_v3, %v1586_v5  ;;  %v1686_v9 = vcombine.high %v1585_v3, %v1586_v5  ;;  %v1687_v10 = vcombine.low %v1587_v4, %v1588_v7  ;;  %v1688_v11 = vcombine.high %v1587_v4, %v1588_v7 }
 0x469   : > { %v1505_v60 = vpop.f32.mrf.mxu0  ;;  %v1548_v61 = vpop.f32.mrf.mxu1 }
 0x46a   : > { %v1695_v12 = vrot.slane %v1685_v8, %v3953_v63  ;;  %v1702_v13 = vrot.slane %v1686_v9, %v3953_v63  ;;  %v1709_v14 = vrot.slane %v1687_v10, %v3953_v63  ;;  %v1716_v15 = vrot.slane %v1688_v11, %v3953_v63 }
 0x46b   : > { %v1842_v62 = vcombine.low %v1503_v54, %v1505_v60  ;;  %v1844_v0 = vcombine.low %v1546_v55, %v1548_v61  ;;  %v1843_v5 = vcombine.high %v1503_v54, %v1505_v60  ;;  %v1845_v7 = vcombine.high %v1546_v55, %v1548_v61 }
 0x46c   : > { %v1717_v20 = vcombine.low %v1695_v12, %v1709_v14  ;;  %v1718_v16 = vcombine.high %v1695_v12, %v1709_v14  ;;  %v1719_v17 = vcombine.low %v1702_v13, %v1716_v15  ;;  %v1720_v18 = vcombine.high %v1702_v13, %v1716_v15 }
 0x46d   : > { %v3357_v23 = vpop.eup %3356  ;;  %v1852_v9 = vrot.slane %v1842_v62, %v3953_v63  ;;  %v1866_v10 = vrot.slane %v1844_v0, %v3953_v63  ;;  %v1859_v14 = vrot.slane %v1843_v5, %v3953_v63  ;;  %v1873_v15 = vrot.slane %v1845_v7, %v3953_v63 }
 0x46e   : > { %v3359_v27 = vpop.eup %3358  ;;  %v1727_v28 = vrot.slane %v1717_v20, %v3953_v63  ;;  %v1734_v29 = vrot.slane %v1719_v17, %v3953_v63  ;;  %v1741_v31 = vrot.slane %v1718_v16, %v3953_v63  ;;  %v1748_v32 = vrot.slane %v1720_v18, %v3953_v63 }
 0x46f   : > { %v3361_v33 = vpop.eup %3360  ;;  %v1874_v16 = vcombine.low %v1852_v9, %v1866_v10 }
 0x470   : > { %v3363_v34 = vpop.eup %3362  ;;  %v1593_v35 = vcombine.low %v3357_v23, %v3361_v33  ;;  %v1594_v36 = vcombine.high %v3357_v23, %v3361_v33  ;;  %v1749_v37 = vcombine.high %v1727_v28, %v1727_v28  ;;  %v1750_v38 = vcombine.high %v1734_v29, %v1734_v29  ;;  %1761 = vst.msk [vmem:[#allocation4] sm:$0xf] %vm3960_vm10, %v1727_v28 }
 0x471   : > { %1762 = vst.msk [vmem:[#allocation4 + $0x4] sm:$0xf] %vm3960_vm10, %v1741_v31  ;;  %1765 = vst.msk [vmem:[#allocation4 + $0x10] sm:$0xf] %vm3960_vm10, %v1734_v29  ;;  %v1595_v19 = vcombine.low %v3359_v27, %v3363_v34  ;;  %v1596_v39 = vcombine.high %v3359_v27, %v3363_v34  ;;  %v1751_v40 = vcombine.high %v1741_v31, %v1741_v31 }
 0x472   : > { %1766 = vst.msk [vmem:[#allocation4 + $0x14] sm:$0xf] %vm3960_vm10, %v1748_v32  ;;  %v1752_v41 = vcombine.high %v1748_v32, %v1748_v32  ;;  %v1603_v42 = vrot.slane %v1593_v35, %v3953_v63  ;;  %v1610_v43 = vrot.slane %v1594_v36, %v3953_v63  ;;  %1763 = vst.msk [vmem:[#allocation4 + $0x8] sm:$0xf] %vm3960_vm10, %v1749_v37 }
 0x473   : > { %1767 = vst.msk [vmem:[#allocation4 + $0x18] sm:$0xf] %vm3960_vm10, %v1750_v38  ;;  %v1617_v44 = vrot.slane %v1595_v19, %v3953_v63  ;;  %v1624_v45 = vrot.slane %v1596_v39, %v3953_v63  ;;  %1764 = vst.msk [vmem:[#allocation4 + $0xc] sm:$0xf] %vm3960_vm10, %v1751_v40  ;;  %v1875_v27 = vcombine.high %v1852_v9, %v1866_v10 }
 0x474   : > { %1768 = vst.msk [vmem:[#allocation4 + $0x1c] sm:$0xf] %vm3960_vm10, %v1752_v41  ;;  %v1876_v28 = vcombine.low %v1859_v14, %v1873_v15  ;;  %v1884_v31 = vrot.slane %v1874_v16, %v3953_v63  ;;  %v1877_v34 = vcombine.high %v1859_v14, %v1873_v15 }
 0x475   : > { %v1625_v46 = vcombine.low %v1603_v42, %v1617_v44  ;;  %v1626_v47 = vcombine.high %v1603_v42, %v1617_v44  ;;  %v1627_v48 = vcombine.low %v1610_v43, %v1624_v45  ;;  %v1628_v49 = vcombine.high %v1610_v43, %v1624_v45 }
 0x476   : > { %v4020_v38 = vrot.slane %v1876_v28, %v3953_v63  ;;  %v1898_v19 = vrot.slane %v1875_v27, %v3953_v63  ;;  %v4026_v44 = vrot.slane %v1877_v34, %v3953_v63 }
 0x477   : > { %v1635_v50 = vrot.slane %v1625_v46, %v3953_v63  ;;  %v1642_v51 = vrot.slane %v1627_v48, %v3953_v63  ;;  %v1649_v52 = vrot.slane %v1626_v47, %v3953_v63  ;;  %v1656_v53 = vrot.slane %v1628_v49, %v3953_v63  ;;  %v1771_v4 = vld [vmem:[#allocation4] sm:$0xf] }
 0x478   : > { %v1778_v13 = vld [vmem:[#allocation4 + $0x4] sm:$0xf]  ;;  %v1906_v48 = vcombine.high %v1884_v31, %v1884_v31  ;;  %v1909_v61 = vcombine.high %v4026_v44, %v4026_v44 }
 0x479   : > { %v1657_v56 = vcombine.high %v1635_v50, %v1635_v50  ;;  %v1658_v57 = vcombine.high %v1642_v51, %v1642_v51  ;;  %v1659_v58 = vcombine.high %v1649_v52, %v1649_v52  ;;  %v1660_v59 = vcombine.high %v1656_v53, %v1656_v53  ;;  %1673 = vst.msk [vmem:[#allocation3] sm:$0xf] %vm3960_vm10, %v1635_v50  ;;  %v1786_v23 = vld [vmem:[#allocation4 + $0x8] sm:$0xf] }
 0x47a   : > { %1674 = vst.msk [vmem:[#allocation3 + $0x4] sm:$0xf] %vm3960_vm10, %v1649_v52  ;;  %1677 = vst.msk [vmem:[#allocation3 + $0x10] sm:$0xf] %vm3960_vm10, %v1642_v51  ;;  %v1794_v37 = vld [vmem:[#allocation4 + $0xc] sm:$0xf]  ;;  %v1907_v52 = vcombine.high %v4020_v38, %v4020_v38 }
 0x47b   : > { %1678 = vst.msk [vmem:[#allocation3 + $0x14] sm:$0xf] %vm3960_vm10, %v1656_v53  ;;  %1675 = vst.msk [vmem:[#allocation3 + $0x8] sm:$0xf] %vm3960_vm10, %v1657_v56  ;;  %v1802_v51 = vld [vmem:[#allocation4 + $0x10] sm:$0xf]  ;;  %v1908_v53 = vcombine.high %v1898_v19, %v1898_v19 }
 0x47c   : > { %1676 = vst.msk [vmem:[#allocation3 + $0xc] sm:$0xf] %vm3960_vm10, %v1659_v58  ;;  %1679 = vst.msk [vmem:[#allocation3 + $0x18] sm:$0xf] %vm3960_vm10, %v1658_v57  ;;  %v1818_v34 = vld [vmem:[#allocation4 + $0x18] sm:$0xf] }
 0x47d   : > { %1680 = vst.msk [vmem:[#allocation3 + $0x1c] sm:$0xf] %vm3960_vm10, %v1660_v59 }
 0x480   : > { %v1769_v1 = vld [vmem:[#allocation3] sm:$0xf] }
 0x481   : > { %v1770_v3 = vmul.f32 0.0, %v1769_v1  ;;  %v1775_v11 = vld [vmem:[#allocation3 + $0x4] sm:$0xf]  ;;  %v1799_v42 = vld [vmem:[#allocation3 + $0x10] sm:$0xf] }
 0x482   : > { %v1783_v17 = vld [vmem:[#allocation3 + $0x8] sm:$0xf]  ;;  %v1807_v59 = vld [vmem:[#allocation3 + $0x14] sm:$0xf] }
 0x483   : > { %v1772_v8 = vadd.f32 %v1771_v4, %v1770_v3  ;;  %v1791_v32 = vld [vmem:[#allocation3 + $0xc] sm:$0xf]  ;;  %v1815_v16 = vld [vmem:[#allocation3 + $0x18] sm:$0xf] }
 0x485   : > { %v1776_v12 = vmul.f32 %v1775_v11, %v1772_v8  ;;  %1773 = vst.msk [vmem:[#allocation5] sm:$0xf] %vm3960_vm10, %v1772_v8  ;;  %v1810_v8 = vld [vmem:[#allocation4 + $0x14] sm:$0xf] }
 0x487   : > { %v1779_v20 = vadd.f32 %v1778_v13, %v1776_v12 }
 0x489   : > { %v1784_v18 = vmul.f32 %v1783_v17, %v1779_v20  ;;  %1781 = vst.msk [vmem:[#allocation5 + $0x4] sm:$0xf] %vm3960_vm10, %v1779_v20 }
 0x48b   : > { %v1787_v29 = vadd.f32 %v1786_v23, %v1784_v18 }
 0x48c   : > { %v1830_v33 = vld [vmem:[#allocation5] sm:$0xf] }
 0x48d   : > { %v1792_v35 = vmul.f32 %v1791_v32, %v1787_v29  ;;  %1789 = vst.msk [vmem:[#allocation5 + $0x8] sm:$0xf] %vm3960_vm10, %v1787_v29  ;;  %v1918_v36 = vmul.f32 %v1884_v31, %v1830_v33 }
 0x48f   : > { %v1795_v39 = vadd.f32 %v1794_v37, %v1792_v35  ;;  %v1937_v40 = vrot.slane %v1918_v36, %v3768_v25  ;;  %v1941_v41 = vrot.slane %v1918_v36, %v3754_v21  ;;  %v4029_v45 = vrot.slane %v1918_v36, %v3757_v22 }
 0x490   : > { %v1831_v43 = vld [vmem:[#allocation5 + $0x4] sm:$0xf]  ;;  %v1949_v46 = vrot.slane %v1918_v36, %v3765_v24 }
 0x491   : > { %v1800_v47 = vmul.f32 %v1799_v42, %v1795_v39  ;;  %1797 = vst.msk [vmem:[#allocation5 + $0xc] sm:$0xf] %vm3960_vm10, %v1795_v39  ;;  %v1919_v49 = vmul.f32 %v1898_v19, %v1831_v43  ;;  %v2094_v50 = vpack.c.bf16 %v1937_v40, %v1937_v40  ;;  %v2095_v54 = vpack.c.bf16 %v1941_v41, %v1941_v41  ;;  %v1823_v40 = vld [vmem:[#allocation3 + $0x1c] sm:$0xf] }
 0x492   : > { %v2097_v63 = vpack.c.bf16 %v1949_v46, %v1949_v46  ;;  %v2096_v0 = vpack.c.bf16 %v4029_v45, %v4029_v45 }
 0x493   : > { %v1803_v55 = vadd.f32 %v1802_v51, %v1800_v47  ;;  %v1953_v56 = vrot.slane %v1919_v49, %v3768_v25  ;;  %v1957_v57 = vrot.slane %v1919_v49, %v3754_v21  ;;  %v1961_v58 = vrot.slane %v1919_v49, %v3757_v22 }
 0x494   : > { %v1832_v60 = vld [vmem:[#allocation5 + $0x8] sm:$0xf]  ;;  %v1965_v62 = vrot.slane %v1919_v49, %v3765_v24  ;;  %v4044_v1 = vunpack.c.l.b16 %v2094_v50  ;;  %v2231_v11 = vunpack.c.l.b16 %v2095_v54  ;;  %v4048_v12 = vunpack.c.l.b16 %v2097_v63 }
 0x495   : > { %v1808_v3 = vmul.f32 %v1807_v59, %v1803_v55  ;;  %1805 = vst.msk [vmem:[#allocation5 + $0x10] sm:$0xf] %vm3960_vm10, %v1803_v55  ;;  %v1920_v4 = vmul.f32 %v1906_v48, %v1832_v60  ;;  %v2098_v5 = vpack.c.bf16 %v1953_v56, %v1953_v56  ;;  %v2099_v7 = vpack.c.bf16 %v1957_v57, %v1957_v57  ;;  %v1826_v55 = vld [vmem:[#allocation4 + $0x1c] sm:$0xf] }
 0x496   : > { %v2100_v9 = vpack.c.bf16 %v1961_v58, %v1961_v58  ;;  %v2101_v10 = vpack.c.bf16 %v1965_v62, %v1965_v62 }
 0x497   : > { %v1811_v13 = vadd.f32 %v1810_v8, %v1808_v3  ;;  %v1969_v14 = vrot.slane %v1920_v4, %v3768_v25  ;;  %v1973_v15 = vrot.slane %v1920_v4, %v3754_v21  ;;  %v1977_v20 = vrot.slane %v1920_v4, %v3757_v22 }
 0x498   : > { %v1833_v17 = vld [vmem:[#allocation5 + $0xc] sm:$0xf]  ;;  %v4054_v18 = vrot.slane %v1920_v4, %v3765_v24  ;;  %v4056_v23 = vunpack.c.l.b16 %v2098_v5  ;;  %v2235_v27 = vunpack.c.l.b16 %v2099_v7  ;;  %v4058_v28 = vunpack.c.l.b16 %v2100_v9 }
 0x499   : > { %v1816_v29 = vmul.f32 %v1815_v16, %v1811_v13  ;;  %1813 = vst.msk [vmem:[#allocation5 + $0x14] sm:$0xf] %vm3960_vm10, %v1811_v13  ;;  %v1921_v31 = vmul.f32 %v1908_v53, %v1833_v17  ;;  %v2102_v32 = vpack.c.bf16 %v1969_v14, %v1969_v14  ;;  %v2103_v33 = vpack.c.bf16 %v1973_v15, %v1973_v15 }
 0x49a   : > { %v2104_v35 = vpack.c.bf16 %v1977_v20, %v1977_v20  ;;  %v2105_v36 = vpack.c.bf16 %v4054_v18, %v4054_v18  ;;  %v4064_v37 = vunpack.c.l.b16 %v2101_v10  ;;  %v2262_v19 = vrot.slane %v4056_v23, 7 }
 0x49b   : > { %v1819_v39 = vadd.f32 %v1818_v34, %v1816_v29  ;;  %v1985_v41 = vrot.slane %v1921_v31, %v3768_v25  ;;  %v1993_v42 = vrot.slane %v1921_v31, %v3757_v22  ;;  %v4069_v43 = vunpack.c.l.b16 %v2102_v32 }
 0x49c   : > { %v1834_v46 = vld [vmem:[#allocation5 + $0x10] sm:$0xf]  ;;  %v4071_v47 = vunpack.c.l.b16 %v2104_v35  ;;  %v2283_v48 = vrot.slane %v2235_v27, 7  ;;  %v2297_v49 = vrot.slane %v4058_v28, 7  ;;  %v2311_v50 = vrot.slane %v4064_v37, 7 }
 0x49d   : > { %v1824_v51 = vmul.f32 %v1823_v40, %v1819_v39  ;;  %1821 = vst.msk [vmem:[#allocation5 + $0x18] sm:$0xf] %vm3960_vm10, %v1819_v39  ;;  %v1922_v53 = vmul.f32 %v4020_v38, %v1834_v46  ;;  %v2106_v54 = vpack.c.bf16 %v1985_v41, %v1985_v41  ;;  %v2108_v63 = vpack.c.bf16 %v1993_v42, %v1993_v42 }
 0x49e   : > { %v2265_v56 = vrot.slane %v4069_v43, 6  ;;  %v2299_v57 = vrot.slane %v4071_v47, 6  ;;  %v1989_v58 = vrot.slane %v1921_v31, %v3754_v21  ;;  %v2239_v59 = vunpack.c.l.b16 %v2103_v33 }
 0x49f   : > { %v1827_v60 = vadd.f32 %v1826_v55, %v1824_v51  ;;  %v2001_v62 = vrot.slane %v1922_v53, %v3768_v25  ;;  %v2009_v3 = vrot.slane %v1922_v53, %v3757_v22  ;;  %v4083_v4 = vunpack.c.l.b16 %v2106_v54 }
 0x4a0   : > { %v1835_v5 = vld [vmem:[#allocation5 + $0x14] sm:$0xf]  ;;  %v4085_v7 = vunpack.c.l.b16 %v2108_v63  ;;  %v2005_v8 = vrot.slane %v1922_v53, %v3754_v21  ;;  %v2107_v9 = vpack.c.bf16 %v1989_v58, %v1989_v58  ;;  %v2284_v10 = vsel %vm2263_vm11, %v2283_v48, %v2231_v11 }
 0x4a1   : > { %1829 = vst.msk [vmem:[#allocation5 + $0x1c] sm:$0xf] %vm3960_vm10, %v1827_v60  ;;  %v1923_v13 = vmul.f32 %v4026_v44, %v1835_v5  ;;  %v2110_v14 = vpack.c.bf16 %v2001_v62, %v2001_v62  ;;  %v2112_v15 = vpack.c.bf16 %v2009_v3, %v2009_v3  ;;  %v2285_v20 = vrot.slane %v2239_v59, 6 }
 0x4a2   : > { %v2111_v16 = vpack.c.bf16 %v2005_v8, %v2005_v8  ;;  %v2243_v17 = vunpack.c.l.b16 %v2107_v9  ;;  %v1997_v18 = vrot.slane %v1921_v31, %v3765_v24  ;;  %v2013_v27 = vrot.slane %v1922_v53, %v3765_v24 }
 0x4a3   : > { %v2017_v29 = vrot.slane %v1923_v13, %v3768_v25  ;;  %v4096_v32 = vrot.slane %v1923_v13, %v3757_v22  ;;  %v4098_v11 = vunpack.c.l.b16 %v2110_v14  ;;  %v4100_v26 = vunpack.c.l.b16 %v2112_v15 }
 0x4a4   : > { %v1836_v33 = vld [vmem:[#allocation5 + $0x18] sm:$0xf]  ;;  %v2021_v34 = vrot.slane %v1923_v13, %v3754_v21  ;;  %v2247_v35 = vunpack.c.l.b16 %v2111_v16  ;;  %v2286_v37 = vsel %vm2266_vm12, %v2285_v20, %v2284_v10  ;;  %v2287_v39 = vrot.slane %v2243_v17, 5 }
 0x4a5   : > { %v4107_v31 = vmul.f32 %v1907_v52, %v1836_v33  ;;  %v2029_v40 = vrot.slane %v1923_v13, %v3765_v24  ;;  %v2109_v41 = vpack.c.bf16 %v1997_v18, %v1997_v18  ;;  %v2113_v42 = vpack.c.bf16 %v2013_v27, %v2013_v27 }
 0x4a6   : > { %v2115_v46 = vpack.c.bf16 %v2021_v34, %v2021_v34  ;;  %v2288_v48 = vsel %vm2269_vm13, %v2287_v39, %v2286_v37  ;;  %v2289_v51 = vrot.slane %v2247_v35, 4  ;;  %v2241_v53 = vunpack.c.l.b16 %v2105_v36 }
 0x4a7   : > { %v2037_v54 = vrot.slane %v4107_v31, %v3754_v21  ;;  %v2045_v63 = vrot.slane %v4107_v31, %v3765_v24  ;;  %v2117_v55 = vpack.c.bf16 %v2029_v40, %v2029_v40  ;;  %v2245_v58 = vunpack.c.l.b16 %v2109_v41 }
 0x4a8   : > { %v1837_v38 = vld [vmem:[#allocation5 + $0x1c] sm:$0xf]  ;;  %v2251_v52 = vunpack.c.l.b16 %v2115_v46  ;;  %v2290_v59 = vsel %vm2272_vm14, %v2289_v51, %v2288_v48  ;;  %v2249_v60 = vunpack.c.l.b16 %v2113_v42  ;;  %v2312_v62 = vsel %vm2263_vm11, %v2311_v50, %v4048_v12 }
 0x4a9   : > { %v1925_v36 = vmul.f32 %v1909_v61, %v1837_v38  ;;  %v2119_v3 = vpack.c.bf16 %v2037_v54, %v2037_v54  ;;  %v2121_v5 = vpack.c.bf16 %v2045_v63, %v2045_v63  ;;  %v2253_v8 = vunpack.c.l.b16 %v2117_v55 }
 0x4aa   : > { %v2291_v9 = vrot.slane %v2251_v52, 3  ;;  %v2313_v10 = vrot.slane %v2241_v53, 6  ;;  %v2315_v13 = vrot.slane %v2245_v58, 5  ;;  %v2317_v14 = vrot.slane %v2249_v60, 4 }
 0x4ab   : > { %v2053_v15 = vrot.slane %v1925_v36, %v3754_v21  ;;  %v2255_v20 = vunpack.c.l.b16 %v2119_v3  ;;  %v2061_v16 = vrot.slane %v1925_v36, %v3765_v24  ;;  %v2257_v17 = vunpack.c.l.b16 %v2121_v5 }
 0x4ac   : > { %v2292_v18 = vsel %vm2275_vm15, %v2291_v9, %v2290_v59  ;;  %v2314_v12 = vsel %vm2266_vm12, %v2313_v10, %v2312_v62  ;;  %v2319_v50 = vrot.slane %v2253_v8, 3  ;;  %v2033_v44 = vrot.slane %v4107_v31, %v3768_v25 }
 0x4ad   : > { %v2123_v61 = vpack.c.bf16 %v2053_v15, %v2053_v15  ;;  %v2293_v27 = vrot.slane %v2255_v20, 2  ;;  %v2125_v33 = vpack.c.bf16 %v2061_v16, %v2061_v16  ;;  %v2316_v34 = vsel %vm2269_vm13, %v2315_v13, %v2314_v12 }
 0x4ae   : > { %v2318_v35 = vsel %vm2272_vm14, %v2317_v14, %v2316_v34  ;;  %v2321_v21 = vrot.slane %v2257_v17, 2  ;;  %v2049_v37 = vrot.slane %v1925_v36, %v3768_v25  ;;  %v2114_v24 = vpack.c.bf16 %v2017_v29, %v2017_v29 }
 0x4af   : > { %v2259_v39 = vunpack.c.l.b16 %v2123_v61  ;;  %v2294_v40 = vsel %vm2278_vm0, %v2293_v27, %v2292_v18  ;;  %v2261_v41 = vunpack.c.l.b16 %v2125_v33  ;;  %v2320_v42 = vsel %vm2275_vm15, %v2319_v50, %v2318_v35 }
 0x4b0   : > { %v2322_v46 = vsel %vm2278_vm0, %v2321_v21, %v2320_v42  ;;  %v2118_v48 = vpack.c.bf16 %v2033_v44, %v2033_v44  ;;  %v2122_v51 = vpack.c.bf16 %v2049_v37, %v2049_v37  ;;  %v2250_v53 = vunpack.c.l.b16 %v2114_v24  ;;  %v3345_v44 = vld [vmem:[%s3718_s7] sm:$0xff]  }
 0x4b1   : > { %v2295_v54 = vrot.slane %v2259_v39, 1  ;;  %v2323_v63 = vrot.slane %v2261_v41, 1  ;;  %v2264_v55 = vsel %vm2263_vm11, %v2262_v19, %v4044_v1  ;;  %v2268_v25 = vrot.slane %v4083_v4, 5  ;;  %v3038_v37 = vld [vmem:[%s858_s23] ss:$0 sm:$0xff] }
 0x4b2   : > { %v2254_v29 = vunpack.c.l.b16 %v2118_v48  ;;  %v2258_v58 = vunpack.c.l.b16 %v2122_v51  ;;  %v2267_v38 = vsel %vm2266_vm12, %v2265_v56, %v2264_v55  ;;  %v2271_v52 = vrot.slane %v4098_v11, 4 }
 0x4b3   : > { %v2296_v59 = vsel %vm2281_vm3, %v2295_v54, %v2294_v40  ;;  %v2324_v60 = vsel %vm2281_vm3, %v2323_v63, %v2322_v46  ;;  %v2270_v62 = vsel %vm2269_vm13, %v2268_v25, %v2267_v38  ;;  %v2274_v3 = vrot.slane %v2250_v53, 3  ;;  %v3368_v38 = vld [vmem:[#allocation2] sm:$0xff] }
 0x4b4   : > { %v2326_v23 = vpack.c.b16 %v2296_v59, %v2296_v59  ;;  %v2328_v5 = vpack.c.b16 %v2324_v60, %v2324_v60  ;;  %v2273_v1 = vsel %vm2272_vm14, %v2271_v52, %v2270_v62  ;;  %v2277_v19 = vrot.slane %v2254_v29, 2 }
 0x4b5   : > { %v2276_v4 = vsel %vm2275_vm15, %v2274_v3, %v2273_v1  ;;  %v2280_v8 = vrot.slane %v2258_v58, 1  ;;  %v2041_v43 = vrot.slane %v4107_v31, %v3757_v22  ;;  %v2057_v56 = vrot.slane %v1925_v36, %v3757_v22 }
 0x4b6   : > { %v2232_v11 = vunpack.c.l.b16 %v2096_v0  ;;  %2557 = vmatprep.mubr.bf16.mxu0 %v2326_v23  ;;  %2597 = vmatprep.mubr.bf16.mxu1 %v2328_v5  ;;  %v2279_v9 = vsel %vm2278_vm0, %v2277_v19, %v2276_v4  ;;  %v2116_v10 = vpack.c.bf16 %v4096_v32, %v4096_v32  ;;  %v2301_v13 = vrot.slane %v4085_v7, 5 }
 0x4b7   : > { %v2282_v14 = vsel %vm2281_vm3, %v2280_v8, %v2279_v9  ;;  %v2120_v15 = vpack.c.bf16 %v2041_v43, %v2041_v43  ;;  %v2124_v20 = vpack.c.bf16 %v2057_v56, %v2057_v56  ;;  %v2303_v45 = vrot.slane %v4100_v26, 4 }
 0x4b8   : > { %v2325_v31 = vpack.c.b16 %v2282_v14, %v2282_v14  ;;  %v2252_v16 = vunpack.c.l.b16 %v2116_v10  ;;  %v2298_v22 = vsel %vm2263_vm11, %v2297_v49, %v2232_v11  ;;  %v2605_v61 = vsub.f32 0.0, %v3773_v30 }
 0x4b9   : > { %v2256_v0 = vunpack.c.l.b16 %v2120_v15  ;;  %v2260_v36 = vunpack.c.l.b16 %v2124_v20  ;;  %v2300_v7 = vsel %vm2266_vm12, %v2299_v57, %v2298_v22  ;;  %v3344_v57 = vld [vmem:[%s3718_s7 + $0x8] sm:$0xff]   ;;  %v2197_v40 = vmul.f32 %v3038_v37, %v3781_v2  ;;  %s4339_s7 = sld [smem:[#allocation12_spill]] }
 0x4ba   : > { %2558 = vmatmul.mubr.bf16.vlgmr.msra.gmra.mxu0 %v2325_v31  ;;  %v2302_v32 = vsel %vm2269_vm13, %v2301_v13, %v2300_v7  ;;  %v2305_v17 = vrot.slane %v2252_v16, 3  ;;  %v2606_v27 = vmul.f32 1.442695, %v2605_v61 }
 0x4bb   : > { %v2304_v18 = vsel %vm2272_vm14, %v2303_v45, %v2302_v32  ;;  %v2307_v12 = vrot.slane %v2256_v0, 2  ;;  %v2309_v28 = vrot.slane %v2260_v36, 1  ;;  %3199 = vmatprep.mubr.msk.bf16.mxu0 %vm3467_vm2, %v3466_v6  ;;  %3196 = vmatpush3.bf16.msra.mxu0 %v3344_v57 }
 0x4bc   : > { %v2306_v49 = vsel %vm2275_vm15, %v2305_v17, %v2304_v18  ;;  %3197 = vmatprep.subr.bf16.mxu0 %v3466_v6  ;;  %3364 = vpow2.f32 %v2606_v27 }
 0x4bd   : > { %v2308_v26 = vsel %vm2278_vm0, %v2307_v12, %v2306_v49 }
 0x4be   : > { %v2310_v47 = vsel %vm2281_vm3, %v2309_v28, %v2308_v26 }
 0x4bf   : > { %v2327_v50 = vpack.c.b16 %v2310_v47, %v2310_v47  ;;  %3198 = vmatpush3.bf16.msra.mxu0 %v3345_v44  ;;  %p3074_p1 = scmp.ne.s32.totalorder %s4339_s7, 1 }
 0x4c0   : > { %s4340_s26 = sld [smem:[#allocation32_spill]] (!%p3074_p1) }
 0x4c1   : > { %2598 = vmatmul.mubr.bf16.vlgmr.msra.gmra.mxu1 %v2327_v50  ;;  %s4341_s2 = sld [smem:[#allocation31_spill]] (!%p3074_p1) }
 0x4c2   : > { %s4342_s6 = sld [smem:[#allocation33_spill]] (!%p3074_p1) }
 0x4c9   : > { %v3365_v33 = vpop.eup %3364 }
 0x4ca   : > { %v2608_v34 = vadd.f32 1.0, %v3365_v33 }
 0x4cc   : > { %3366 = vrcp.f32 %v2608_v34 }
 0x4d9   : > { %v3367_v46 = vpop.eup %3366 }
 0x4da   : > { %v2610_v54 = vmul.f32 %v3367_v46, %v3773_v30 }
 0x57a   : > { %v3120_v35 = vpop.f32.mrf.mxu0 }
 0x57c   : > { %v3121_v21 = vpop.f32.mrf.mxu0 }
 0x57d   : > { %v3122_v24 = vadd.f32 %v3121_v21, %v3120_v35 }
 0x57e   : > { %v3123_v39 = vpop.f32.mrf.mxu0 }
 0x57f   : > { %v2560_v42 = vadd.f32 %v3122_v24, %v2197_v40 }
 0x580   : > { %v3124_v6 = vpop.f32.mrf.mxu0 }
 0x581   : > { %v3142_v41 = vpop.f32.mrf.mxu1 }
 0x583   : > { %v3143_v48 = vpop.f32.mrf.mxu1 }
 0x584   : > { %v3144_v51 = vadd.f32 %v3143_v48, %v3142_v41 }
 0x585   : > { %v3145_v53 = vpop.f32.mrf.mxu1 }
 0x586   : > { %v2600_v63 = vadd.f32 %v3144_v51, %v2560_v42 }
 0x587   : > { %v3146_v55 = vpop.f32.mrf.mxu1 }
 0x588   : > { %v2611_v25 = vmul.f32 %v2610_v54, %v2600_v63 }
 0x58a   : > { %v2612_v29 = vpack.c.bf16 %v2611_v25, %v2611_v25 }
 0x58c   : > { %3200 = vmatmul.mubr.msk.bf16.vlgmr.msra.gmra.mxu0 %vm1076_vm8, %v2612_v29 }
 0x64c   : > { %v2666_v58 = vpop.f32.mrf.mxu0 }
 0x64d   : > { %v2672_v52 = vadd.f32 %v3368_v38, %v2666_v58 }
 0x64e   : > { %v3201_v59 = vpop.f32.mrf.mxu0  ;;  %2677 = sbr.rel (%p3074_p1) target bundleno = 1983 (0x7bf), region = 108 }
 0x64f   : > { %2673 = vst.msk [vmem:[#allocation2] sm:$0xff] %vm875_vm1, %v2672_v52 }
 0x650   : > { %v2669_v2 = vpop.f32.mrf.mxu0 }
 0x652   : > { %v3202_v60 = vpop.f32.mrf.mxu0 }
 0x653   : > { %v2679_v62 = vmul.f32 %v2672_v52, %v2672_v52  ;;  %v3369_v3 = vld [vmem:[%s4340_s26] sm:$0xff]   ;;  %v3470_v23 = vmov 0.0   ;;  %vm3471_vm2 = vmmov 0  }
 0x654   : > { %3203 = vmatprep.subr.bf16.mxu0 %v3470_v23  ;;  %3205 = vmatprep.mubr.msk.bf16.mxu0 %vm3471_vm2, %v3470_v23  ;;  %v3075_v8 = vld [vmem:[%s4341_s2] ss:$0 sm:$0xff] }
 0x655   : > { %v2680_v30 = vsel %vm875_vm1, %v2679_v62, 0.0  ;;  %3204 = vmatpush3.bf16.msra.mxu0 %v3369_v3  ;;  %v3076_v9 = vld [vmem:[%s4342_s6] ss:$0 sm:$0xff] }
 0x656   : > { %2681 = vadd.xlane.f32.xlu0 %v2680_v30 }
 0x6df   : > { %v2682_v5 = vpop.xlane.xlu0 %2681 }
 0x6e0   : > { %v2683_v1 = vmul.f32 0.0625, %v2682_v5 }
 0x6e2   : > { %v2684_v19 = vadd.f32 1e-05, %v2683_v1 }
 0x6e4   : > { %3370 = vrsqrt.f32 %v2684_v19 }
 0x6f1   : > { %v3371_v4 = vpop.eup %3370 }
 0x6f2   : > { %v2686_v43 = vmul.f32 %v3371_v4, %v2672_v52 }
 0x6f4   : > { %v2693_v56 = vmul.f32 %v3075_v8, %v2686_v43 }
 0x6f6   : > { %v2694_v11 = vpack.c.bf16 %v2693_v56, %v2693_v56 }
 0x6f8   : > { %3206 = vmatmul.mubr.msk.bf16.vlgmr.msra.gmra.mxu0 %vm875_vm1, %v2694_v11 }
 0x7b8   : > { %v2747_v10 = vpop.f32.mrf.mxu0 }
 0x7b9   : > { %v2748_v13 = vadd.f32 %v3076_v9, %v2747_v10 }
 0x7ba   : > { %v3207_v14 = vpop.f32.mrf.mxu0 }
 0x7bb   : > { %2753 = vst [vmem:[%s805_s18] sm:$0xff] %v2748_v13 }
 0x7bc   : > { %v2750_v15 = vpop.f32.mrf.mxu0 }
 0x7be   : > { %v3208_v20 = vpop.f32.mrf.mxu0 }
 0x7bf PF: > { %s4343_s17 = sld [smem:[#allocation13_spill]]  ;;  %s2768_s22 = sshll.u32 %s805_s18, 4  ;;  %s2769_s22 = int_to_ptr.vmem [resolvable:$true] %s2768_s22 }
 0x7c0   : > { %s4344_s20 = sld [smem:[#allocation10_spill]]  ;;  %s3372_s7 = scalar_lea.vmem %s2769_s22, 128 }
 0x7c1   : > { %s4346_s16 = sld [smem:[#allocation37_spill]]  ;;  %p3373_p2 = scmp.ne.s32.totalorder %s2769_s22, %s3372_s7 }
 0x7c2   : > { %s3472_s1 = smov [#allocation6]  }
 0x7c3   : > { %p3374_p4 = pnand %p3373_p2, %p3627_p3  ;;  %s3376_s23 = sshll.u32 %s3472_s1, 4  ;;  %s3377_s23 = int_to_ptr.vmem [resolvable:$false] %s3376_s23 }
 0x7c4   : > { %s3378_s26 = scalar_lea.vmem %s3377_s23, 256  ;;  %p3379_p6 = scmp.lt.s32.totalorder %s2769_s22, %s3377_s23 }
 0x7c5   : > { %s3080_s13 = sshll.u32 %s4343_s17, 7  ;;  %p3375_p5 = pneg %p3374_p4 }
 0x7c6   : > { %s4347_s12 = sand.u32 1, %s4344_s20   ;;  %p3380_p7 = scmp.lt.s32.totalorder %s3378_s26, %s3372_s7 }
 0x7c7   : > { %s2766_s14 = scalar_lea.hbm %s4346_s16, %s3080_s13  ;;  %s2755_s21 = scalar_lea.sflag [#allocation7], %s4347_s12 }
 0x7c8   : > { %p3381_p8 = por %p3380_p7, %p3379_p6 }
 0x7ca   : > { %p3382_p10 = pnand %p3381_p8, %p3375_p5 }
 0x7cc   : > { %3385 = shalt.err (!%p3382_p10)
}
 0x7cd   : > { %s3386_s24 = scalar_lea.hbm %s2766_s14, 128  ;;  %s3390_s28 = scalar_lea.hbm %s4346_s16, 256 }
 0x7ce   : > { %p3387_p11 = scmp.ne.s32.totalorder %s2766_s14, %s3386_s24  ;;  %p3391_p0 = scmp.lt.s32.totalorder %s2766_s14, %s4346_s16 }
 0x7cf   : > { %p3392_p1 = scmp.lt.s32.totalorder %s3390_s28, %s3386_s24 }
 0x7d0   : > { %p3388_p12 = pnand %p3387_p11, %p3627_p3 }
 0x7d1   : > { %p3393_p2 = por %p3392_p1, %p3391_p0 }
 0x7d2   : > { %p3389_p13 = pneg %p3388_p12 }
 0x7d4   : > { %p3394_p4 = pnand %p3393_p2, %p3389_p13 }
 0x7d6   : > { %3397 = shalt.err (!%p3394_p4)
}
 0x7d7   : > { %3209 = dma.vmem_to_hbm [thread:$0]  (%p3627_p3), %s2769_s22, 128, %s2766_s14, %s2755_s21  }
 0x7d8 PF: > { %s4348_s29 = sld [smem:[#allocation16_spill]] }
 0x7d9   : > { %s4349_s6 = sld [smem:[#allocation9_spill]] }
 0x7de   : > { %p3215_p5 = scmp.ge.s32.totalorder %s4348_s29, 2 }
 0x7df   : > { %s2780_s20 = sand.u32 1, %s4349_s6  }
 0x7e0   : > { %p3212_p6 = pnand %p3215_p5, %p3637_p9  ;;  %s2781_s13 = scalar_lea.sflag [#allocation7], %s2780_s20 }
 0x7e2   : > { %p3213_p7 = pneg %p3212_p6 }
 0x7e4   : > { %3431 = dma.done.wait (%p3213_p7), %s2781_s13, 128  }
 0x7e5   : > { %3433 = vsyncadd (%p3213_p7), %s2781_s13, 4294967168  ;;  %s33_s26 = sadd.s32 1, %s4348_s29   ;;  %s4351_s1 = sld [smem:[#allocation10_spill]] }
 0x7e6   : > { %p30_p8 = scmp.ge.s32.totalorder %s33_s26, 6   ;;  %s4352_s22 = sld [smem:[#allocation11_spill]] }
 0x7e7   : > { %s4353_s23 = sld [smem:[#allocation21_spill]] }
 0x7e8   : > { %s4354_s24 = sld [smem:[#allocation14_spill]]  ;;  %32 = sbr.rel (!%p30_p8) target bundleno = 22 (0x16), region = 203 }
 0x7e9   : > { %s4355_s2 = sld [smem:[#allocation15_spill]] }
 0x7ea   : > { %s4356_s25 = sld [smem:[#allocation17_spill]] }
 0x7eb   : > { %s4357_s3 = sld [smem:[#allocation19_spill]] }
 0x7ed   :  { %2786 = vsyncpa [#allocation7], 1 }
 0x7ee   :  { %2788 = vsyncpa [#allocation7 + $0x1], 1 }

</bundles_post_ra>
